<compile_context>
chip_gen: v5e
topology: v5e:2x2
jax: 0.10.0
libtpu: 0.0.40
codegen_flags: <defaults>
</compile_context>

<pallas_src>
import jax
import jax.numpy as jnp
from jax.experimental import pallas as pl
from jax.experimental.pallas import tpu as pltpu

_LANE = 128


def _round_up(x, m):
    return ((x + m - 1) // m) * m


def _make_kernel(mxu_dtype, emit_aux):
    """Fused kernel body.

    mxu_dtype: dtype of MXU matmul operands (bf16 on v6e/v7x for 2x MXU
               throughput, or f32 for exact aux maps).  Accumulation is
               always f32 via preferred_element_type.
    emit_aux:  whether to write the merged (w1^T, w2, masked score) stream.
    """

    def kernel(l1_ref, l2_ref,                     # (TB,1,1) int32 lengths
               k1_ref, k2_ref, v1_ref, v2_ref,     # (TB,L1,K1p)(TB,L2,K2p)(TB,L1,Dv1)(TB,L2,Dv2)
               w1t_ref, b1_ref, w2t_ref, b2_ref,   # (K1p,Ap)(1,Ap)(K2p,Ap)(1,Ap)
               *out_refs):
        if emit_aux:
            o1_ref, o2_ref, aux_ref = out_refs
        else:
            o1_ref, o2_ref = out_refs

        TB, L1, K1 = k1_ref.shape
        _, L2, K2 = k2_ref.shape
        A = w1t_ref.shape[1]
        Dv1 = v1_ref.shape[2]
        Dv2 = v2_ref.shape[2]

        # ---- fused projections: one (TB*L, K) @ (K, A) MXU dot per side ----
        k1_flat = k1_ref[...].reshape(TB * L1, K1).astype(mxu_dtype)
        k2_flat = k2_ref[...].reshape(TB * L2, K2).astype(mxu_dtype)
        k1p = (jnp.dot(k1_flat, w1t_ref[...].astype(mxu_dtype),
                       preferred_element_type=jnp.float32)
               + b1_ref[...]).reshape(TB, L1, A)
        k2p = (jnp.dot(k2_flat, w2t_ref[...].astype(mxu_dtype),
                       preferred_element_type=jnp.float32)
               + b2_ref[...]).reshape(TB, L2, A)

        # ---- score[b,i,j] = sum_a k1p[b,i,a] * k2p[b,j,a] -------------------
        score = jnp.einsum("bia,bja->bij",
                           k1p.astype(mxu_dtype), k2p.astype(mxu_dtype),
                           preferred_element_type=jnp.float32)    # (TB,L1,L2) f32

        # ---- length mask: fill -inf where EXACTLY one of the row/col
        #      conditions holds (torch "count == 1" == XOR); the padded corner
        #      keeps its raw score, matching the reference bit-for-bit. -------
        row_ge = (jax.lax.broadcasted_iota(jnp.int32, (TB, L1, 1), 1)
                  >= l1_ref[...])                                  # (TB,L1,1)
        col_ge = (jax.lax.broadcasted_iota(jnp.int32, (TB, 1, L2), 2)
                  >= l2_ref[...])                                  # (TB,1,L2)
        mask = jnp.logical_xor(row_ge, col_ge)                     # (TB,L1,L2)
        masked = jnp.where(mask, -jnp.inf, score)

        # ---- w2 = softmax(score, dim=-1)  (exact normalization) -------------
        m2 = jnp.max(masked, axis=-1, keepdims=True)
        e2 = jnp.exp(masked - m2)
        w2 = e2 / jnp.sum(e2, axis=-1, keepdims=True)

        # ---- w1^T = softmax over the L1 axis, kept in the lane-dense (L1,L2)
        #      layout so no XLU transpose of the score tile is needed. --------
        m1 = jnp.max(masked, axis=1, keepdims=True)
        e1 = jnp.exp(masked - m1)
        w1t = e1 / jnp.sum(e1, axis=1, keepdims=True)

        # ---- o1 = bmm(w1, v1); o2 = bmm(w2, v2) ------------------------------
        # o1 contracts the L1 axis of w1^T directly; the "transposed" operand
        # orientation is handled by the MXU feed (no materialized transpose).
        o1 = jnp.einsum("bil,bid->bld",
                        w1t.astype(mxu_dtype), v1_ref[...].astype(mxu_dtype),
                        preferred_element_type=jnp.float32)        # (TB,L2,Dv1)
        o2 = jnp.einsum("bil,bld->bid",
                        w2.astype(mxu_dtype), v2_ref[...].astype(mxu_dtype),
                        preferred_element_type=jnp.float32)        # (TB,L1,Dv2)

        # ---- lane-dense stores (trailing dim = L*Dv / L1*L2, >=128) ----------
        o1_ref[...] = o1.reshape(TB, 1, L2 * Dv1).astype(o1_ref.dtype)
        o2_ref[...] = o2.reshape(TB, 1, L1 * Dv2).astype(o2_ref.dtype)
        if emit_aux:
            LL = L1 * L2
            aux_ref[:, 0:1, :] = w1t.reshape(TB, 1, LL).astype(aux_ref.dtype)
            aux_ref[:, 1:2, :] = w2.reshape(TB, 1, LL).astype(aux_ref.dtype)
            aux_ref[:, 2:3, :] = masked.reshape(TB, 1, LL).astype(aux_ref.dtype)

    return kernel


def _vmem_budget_bytes():
    """~75% of this chip's VMEM when queryable; a v7x-safe fallback otherwise."""
    try:
        cap = getattr(pltpu.get_tpu_info(), "vmem_capacity_bytes", None)
        if cap:
            return int(cap) * 3 // 4        # v5e/v6e -> ~96 MiB, v7x -> ~48 MiB
    except Exception:
        pass
    return 48 * 1024 * 1024                 # safe on 64 MiB (v7x) and 128 MiB parts


def _select_block_b(B, per_example_bytes, fixed_bytes, budget_bytes,
                    num_tensorcores):
    """Largest divisor of B whose (double-buffered) block fits the VMEM budget
    while leaving at least `num_tensorcores` grid steps for megacore sharding."""
    avail = max(budget_bytes - fixed_bytes, per_example_bytes)
    tb_fit = max(1, avail // max(per_example_bytes, 1))
    tb_cap = max(1, B // max(num_tensorcores, 1))
    tb_max = int(min(tb_fit, tb_cap, B))
    for tb in range(tb_max, 0, -1):
        if B % tb == 0:
            return tb
    return 1


def bidirectional_attention(params, k1, k2, v1, v2,
                            k1_lengths=None, k2_lengths=None, *,
                            block_b=None,
                            mxu_dtype=jnp.bfloat16,
                            return_aux=True,
                            aux_dtype=jnp.float32,
                            slice_aux=True,
                            pad_feature_lanes=True,
                            num_tensorcores=1,
                            vmem_budget_bytes=None):
    """Fused Pallas forward of BidirectionalAttention.

    params = (W1, b1, W2, b2) with W1: (A, K1), W2: (A, K2).
    Returns (o1, o2, w1_list, w2_list, score_list) when return_aux=True
    (exact module semantics) or just (o1, o2) when return_aux=False (skips the
    dominant aux HBM writeback).  Set num_tensorcores=2 on dual-TC parts (v7x)
    so the batch grid is split across both cores; single-TC parts (v5e/v6e)
    default to one big batch block.
    """
    W1, b1, W2, b2 = params
    B, L1, K1 = k1.shape
    _, L2, K2 = k2.shape
    Dv1 = v1.shape[-1]
    Dv2 = v2.shape[-1]
    A = W1.shape[0]

    # Host lengths taken ONCE (at most a single device->host sync).
    l1s = [L1] * B if k1_lengths is None else [int(x) for x in k1_lengths]
    l2s = [L2] * B if k2_lengths is None else [int(x) for x in k2_lengths]
    l1_dev = jnp.asarray(l1s, jnp.int32).reshape(B, 1, 1)
    l2_dev = jnp.asarray(l2s, jnp.int32).reshape(B, 1, 1)

    w1t = W1.T                               # (K1, A)
    w2t = W2.T                               # (K2, A)
    b1r = b1.reshape(1, A)
    b2r = b2.reshape(1, A)

    # Zero-pad contraction / attention lanes to the 128-lane vreg width.
    # Exact: padded weight columns and bias entries are 0 -> contribute 0.
    if pad_feature_lanes:
        K1p = _round_up(K1, _LANE)
        K2p = _round_up(K2, _LANE)
        Ap = _round_up(A, _LANE)
        if K1p != K1:
            k1 = jnp.pad(k1, ((0, 0), (0, 0), (0, K1p - K1)))
            w1t = jnp.pad(w1t, ((0, K1p - K1), (0, 0)))
        if K2p != K2:
            k2 = jnp.pad(k2, ((0, 0), (0, 0), (0, K2p - K2)))
            w2t = jnp.pad(w2t, ((0, K2p - K2), (0, 0)))
        if Ap != A:
            w1t = jnp.pad(w1t, ((0, 0), (0, Ap - A)))
            w2t = jnp.pad(w2t, ((0, 0), (0, Ap - A)))
            b1r = jnp.pad(b1r, ((0, 0), (0, Ap - A)))
            b2r = jnp.pad(b2r, ((0, 0), (0, Ap - A)))
    else:
        K1p, K2p, Ap = K1, K2, A

    # ---- VMEM-budgeted batch blocking ---------------------------------------
    budget = _vmem_budget_bytes() if vmem_budget_bytes is None else int(vmem_budget_bytes)
    f32 = 4
    per_ex = (2 * (L1 * K1p + L2 * K2p + L1 * Dv1 + L2 * Dv2      # dbl-buffered inputs
                   + L2 * Dv1 + L1 * Dv2                          # dbl-buffered outputs
                   + (3 * L1 * L2 if return_aux else 0))          # dbl-buffered aux
              + (L1 * Ap + L2 * Ap + 6 * L1 * L2)) * f32          # live temporaries
    fixed = 2 * (K1p * Ap + K2p * Ap + 2 * Ap) * f32              # weights / bias
    if block_b is not None:
        TB = block_b
        assert B % TB == 0, "block_b must divide the batch size"
    else:
        TB = _select_block_b(B, per_ex, fixed, budget, num_tensorcores)

    idx_b = lambda b: (b, 0, 0)
    idx_w = lambda b: (0, 0)

    in_specs = [
        pl.BlockSpec((TB, 1, 1), idx_b),        # l1
        pl.BlockSpec((TB, 1, 1), idx_b),        # l2
        pl.BlockSpec((TB, L1, K1p), idx_b),     # k1
        pl.BlockSpec((TB, L2, K2p), idx_b),     # k2
        pl.BlockSpec((TB, L1, Dv1), idx_b),     # v1
        pl.BlockSpec((TB, L2, Dv2), idx_b),     # v2
        pl.BlockSpec((K1p, Ap), idx_w),         # W1^T
        pl.BlockSpec((1, Ap), idx_w),           # b1
        pl.BlockSpec((K2p, Ap), idx_w),         # W2^T
        pl.BlockSpec((1, Ap), idx_w),           # b2
    ]
    # Lane-dense output slabs; aux merged into one output stream.
    out_shapes = [
        jax.ShapeDtypeStruct((B, 1, L2 * Dv1), jnp.float32),      # o1 slab
        jax.ShapeDtypeStruct((B, 1, L1 * Dv2), jnp.float32),      # o2 slab
    ]
    out_specs = [
        pl.BlockSpec((TB, 1, L2 * Dv1), idx_b),
        pl.BlockSpec((TB, 1, L1 * Dv2), idx_b),
    ]
    if return_aux:
        out_shapes.append(jax.ShapeDtypeStruct((B, 3, L1 * L2), aux_dtype))
        out_specs.append(pl.BlockSpec((TB, 3, L1 * L2), idx_b))

    grid_spec = pltpu.PrefetchScalarGridSpec(
        num_scalar_prefetch=0,
        grid=(B // TB,),
        in_specs=in_specs,
        out_specs=out_specs,
    )

    outs = pl.pallas_call(
        _make_kernel(mxu_dtype, return_aux),
        out_shape=tuple(out_shapes),
        grid_spec=grid_spec,
        compiler_params=pltpu.CompilerParams(
            dimension_semantics=("parallel",),
            vmem_limit_bytes=int(budget),
        ),
    )(l1_dev, l2_dev, k1, k2, v1, v2, w1t, b1r, w2t, b2r)

    o1 = outs[0].reshape(B, L2, Dv1)
    o2 = outs[1].reshape(B, L1, Dv2)
    if not return_aux:
        return o1, o2

    aux = outs[2].reshape(B, 3, L1, L2)
    w1t_arr, w2_arr, score_arr = aux[:, 0], aux[:, 1], aux[:, 2]
    if not slice_aux:
        # Dense form (w1 kept transposed as (B,L1,L2)) + host lengths: avoids
        # launching B tiny slice/transpose XLA ops per call for large B.
        return o1, o2, w1t_arr, w2_arr, score_arr

    # Ragged per-example views, matching the torch list comprehensions.
    w1_list = [w1t_arr[i, :l1s[i], :l2s[i]].T for i in range(B)]
    w2_list = [w2_arr[i, :l1s[i], :l2s[i]] for i in range(B)]
    score_list = [score_arr[i, :l1s[i], :l2s[i]] for i in range(B)]
    return o1, o2, w1_list, w2_list, score_list


def _reference(params, k1, k2, v1, v2, k1_lengths, k2_lengths):
    """Pure-JAX reference mirroring the PyTorch forward (highest precision)."""
    W1, b1, W2, b2 = params
    hp = "highest"
    k1p = jnp.einsum("blk,ak->bla", k1, W1, precision=hp) + b1
    k2p = jnp.einsum("blk,ak->bla", k2, W2, precision=hp) + b2
    score = jnp.einsum("bia,bja->bij", k1p, k2p, precision=hp)
    B, L1, L2 = score.shape
    row = jnp.arange(L1)[None, :, None]
    col = jnp.arange(L2)[None, None, :]
    cnt = ((row >= jnp.asarray(k1_lengths)[:, None, None]).astype(jnp.int32)
           + (col >= jnp.asarray(k2_lengths)[:, None, None]).astype(jnp.int32))
    score = jnp.where(cnt == 1, -jnp.inf, score)
    w1 = jax.nn.softmax(jnp.swapaxes(score, 1, 2), axis=-1)
    w2 = jax.nn.softmax(score, axis=-1)
    o1 = jnp.einsum("bji,bid->bjd", w1, v1, precision=hp)
    o2 = jnp.einsum("bij,bjd->bid", w2, v2, precision=hp)
    return o1, o2, w1, w2, score


if __name__ == "__main__":
    B, L1, L2 = 4, 8, 16
    K1_DIM, K2_DIM, ATTN_DIM = 16, 24, 32
    DV1, DV2 = 16, 32

    key = jax.random.PRNGKey(0)
    ks = jax.random.split(key, 8)
    W1 = jax.random.normal(ks[0], (ATTN_DIM, K1_DIM), jnp.float32) * 0.1
    b1 = jax.random.normal(ks[1], (ATTN_DIM,), jnp.float32) * 0.1
    W2 = jax.random.normal(ks[2], (ATTN_DIM, K2_DIM), jnp.float32) * 0.1
    b2 = jax.random.normal(ks[3], (ATTN_DIM,), jnp.float32) * 0.1
    params = (W1, b1, W2, b2)

    k1 = jax.random.normal(ks[4], (B, L1, K1_DIM), jnp.float32)
    k2 = jax.random.normal(ks[5], (B, L2, K2_DIM), jnp.float32)
    v1 = jax.random.normal(ks[6], (B, L1, DV1), jnp.float32)
    v2 = jax.random.normal(ks[7], (B, L2, DV2), jnp.float32)

    # Lengths strictly inside (0, L): no softmax row/column is fully masked
    # (an all -inf row would be NaN, a property shared with the torch module).
    k1_lengths = [6, 5, 7, 3]
    k2_lengths = [12, 10, 7, 14]

    ro1, ro2, rw1, rw2, rscore = _reference(params, k1, k2, v1, v2,
                                            k1_lengths, k2_lengths)

    # ---- exact path: f32 MXU operands, full aux outputs ----------------------
    o1, o2, w1_list, w2_list, score_list = bidirectional_attention(
        params, k1, k2, v1, v2, k1_lengths, k2_lengths,
        mxu_dtype=jnp.float32)
    jax.block_until_ready((o1, o2))

    assert jnp.allclose(o1, ro1, atol=1e-2, rtol=1e-2)
    assert jnp.allclose(o2, ro2, atol=1e-2, rtol=1e-2)
    for i in range(B):
        l1i, l2i = k1_lengths[i], k2_lengths[i]
        assert jnp.allclose(w1_list[i], rw1[i, :l2i, :l1i], atol=1e-2, rtol=1e-2)
        assert jnp.allclose(w2_list[i], rw2[i, :l1i, :l2i], atol=1e-2, rtol=1e-2)
        assert jnp.allclose(score_list[i], rscore[i, :l1i, :l2i],
                            atol=1e-2, rtol=1e-2)

    # ---- default fast path: bf16 MXU operands, no aux HBM writeback ----------
    o1_bf, o2_bf = bidirectional_attention(
        params, k1, k2, v1, v2, k1_lengths, k2_lengths, return_aux=False)
    jax.block_until_ready((o1_bf, o2_bf))
    assert jnp.allclose(o1_bf, ro1, atol=1e-1, rtol=5e-2)
    assert jnp.allclose(o2_bf, ro2, atol=1e-1, rtol=5e-2)

    print("KERNEL_OK")
</pallas_src>

<mosaic_0001>
module attributes {stable_mosaic.version = 11 : i64} {
  func.func @kernel(%arg0: i32, %arg1: memref<4x1x1xi32, #tpu.memory_space<vmem>>, %arg2: memref<4x1x1xi32, #tpu.memory_space<vmem>>, %arg3: memref<4x8x128xf32, #tpu.memory_space<vmem>>, %arg4: memref<4x16x128xf32, #tpu.memory_space<vmem>>, %arg5: memref<4x8x16xf32, #tpu.memory_space<vmem>>, %arg6: memref<4x16x32xf32, #tpu.memory_space<vmem>>, %arg7: memref<128x128xf32, #tpu.memory_space<vmem>>, %arg8: memref<1x128xf32, #tpu.memory_space<vmem>>, %arg9: memref<128x128xf32, #tpu.memory_space<vmem>>, %arg10: memref<1x128xf32, #tpu.memory_space<vmem>>, %arg11: memref<4x1x256xf32, #tpu.memory_space<vmem>>, %arg12: memref<4x1x256xf32, #tpu.memory_space<vmem>>, %arg13: memref<4x3x128xf32, #tpu.memory_space<vmem>>) attributes {dimension_semantics = [#tpu.dimension_semantics<parallel>], iteration_bounds = array<i64: 1>, scalar_prefetch = 0 : i64, scratch_operands = 0 : i64, tpu.core_type = #tpu.core_type<tc>, window_params = [{transform_indices = @transform_0, window_bounds = array<i64: 4, 1, 1>}, {transform_indices = @transform_1, window_bounds = array<i64: 4, 1, 1>}, {transform_indices = @transform_2, window_bounds = array<i64: 4, 8, 128>}, {transform_indices = @transform_3, window_bounds = array<i64: 4, 16, 128>}, {transform_indices = @transform_4, window_bounds = array<i64: 4, 8, 16>}, {transform_indices = @transform_5, window_bounds = array<i64: 4, 16, 32>}, {pipeline_mode = #tpu.pipeline_mode<synchronous>, transform_indices = @transform_6, window_bounds = array<i64: 128, 128>}, {pipeline_mode = #tpu.pipeline_mode<synchronous>, transform_indices = @transform_7, window_bounds = array<i64: 1, 128>}, {pipeline_mode = #tpu.pipeline_mode<synchronous>, transform_indices = @transform_8, window_bounds = array<i64: 128, 128>}, {pipeline_mode = #tpu.pipeline_mode<synchronous>, transform_indices = @transform_9, window_bounds = array<i64: 1, 128>}, {transform_indices = @transform_10, window_bounds = array<i64: 4, 1, 256>}, {transform_indices = @transform_11, window_bounds = array<i64: 4, 1, 256>}, {transform_indices = @transform_12, window_bounds = array<i64: 4, 3, 128>}]} {
    %c0 = arith.constant 0 : index
    %c0_0 = arith.constant 0 : index
    %c0_1 = arith.constant 0 : index
    %0 = vector.load %arg3[%c0, %c0_0, %c0_1] : memref<4x8x128xf32, #tpu.memory_space<vmem>>, vector<4x8x128xf32>
    %1 = vector.shape_cast %0 : vector<4x8x128xf32> to vector<32x128xf32>
    %c0_2 = arith.constant 0 : index
    %c0_3 = arith.constant 0 : index
    %c0_4 = arith.constant 0 : index
    %2 = vector.load %arg4[%c0_2, %c0_3, %c0_4] : memref<4x16x128xf32, #tpu.memory_space<vmem>>, vector<4x16x128xf32>
    %3 = vector.shape_cast %2 : vector<4x16x128xf32> to vector<64x128xf32>
    %c0_5 = arith.constant 0 : index
    %c0_6 = arith.constant 0 : index
    %4 = vector.load %arg7[%c0_5, %c0_6] : memref<128x128xf32, #tpu.memory_space<vmem>>, vector<128x128xf32>
    %cst = arith.constant dense<0.000000e+00> : vector<32x128xf32>
    %5 = tpu.matmul %1, %4, %cst {dimension_numbers = #tpu.dot_dimension_numbers<[1], [0], [0], [1], [0, 0, 1, 1], [], []>} : vector<32x128xf32>, vector<128x128xf32>, vector<32x128xf32> -> vector<32x128xf32>
    %c0_7 = arith.constant 0 : index
    %c0_8 = arith.constant 0 : index
    %6 = vector.load %arg8[%c0_7, %c0_8] : memref<1x128xf32, #tpu.memory_space<vmem>>, vector<1x128xf32>
    %7 = vector.broadcast %6 : vector<1x128xf32> to vector<32x128xf32>
    %8 = arith.addf %5, %7 : vector<32x128xf32>
    %9 = vector.shape_cast %8 : vector<32x128xf32> to vector<4x8x128xf32>
    %c0_9 = arith.constant 0 : index
    %c0_10 = arith.constant 0 : index
    %10 = vector.load %arg9[%c0_9, %c0_10] : memref<128x128xf32, #tpu.memory_space<vmem>>, vector<128x128xf32>
    %cst_11 = arith.constant dense<0.000000e+00> : vector<64x128xf32>
    %11 = tpu.matmul %3, %10, %cst_11 {dimension_numbers = #tpu.dot_dimension_numbers<[1], [0], [0], [1], [0, 0, 1, 1], [], []>} : vector<64x128xf32>, vector<128x128xf32>, vector<64x128xf32> -> vector<64x128xf32>
    %c0_12 = arith.constant 0 : index
    %c0_13 = arith.constant 0 : index
    %12 = vector.load %arg10[%c0_12, %c0_13] : memref<1x128xf32, #tpu.memory_space<vmem>>, vector<1x128xf32>
    %13 = vector.broadcast %12 : vector<1x128xf32> to vector<64x128xf32>
    %14 = arith.addf %11, %13 : vector<64x128xf32>
    %15 = vector.shape_cast %14 : vector<64x128xf32> to vector<4x16x128xf32>
    "tpu.trace_start"() <{level = 10 : i32, message = "bia,bja->bij"}> : () -> ()
    %cst_14 = arith.constant dense<0.000000e+00> : vector<4x8x16xf32>
    %16 = tpu.matmul %9, %15, %cst_14 {dimension_numbers = #tpu.dot_dimension_numbers<[2], [2], [1], [1], [0, 0, 0, 1, 1, 1], [0], [0]>} : vector<4x8x128xf32>, vector<4x16x128xf32>, vector<4x8x16xf32> -> vector<4x8x16xf32>
    "tpu.trace_stop"() : () -> ()
    %17 = tpu.iota {dimensions = array<i32: 1>} : vector<4x8x1xi32>
    %c0_15 = arith.constant 0 : index
    %c0_16 = arith.constant 0 : index
    %c0_17 = arith.constant 0 : index
    %18 = vector.load %arg1[%c0_15, %c0_16, %c0_17] : memref<4x1x1xi32, #tpu.memory_space<vmem>>, vector<4x1x1xi32>
    %19 = vector.broadcast %18 : vector<4x1x1xi32> to vector<4x8x1xi32>
    %20 = arith.cmpi sge, %17, %19 : vector<4x8x1xi32>
    %21 = tpu.iota {dimensions = array<i32: 2>} : vector<4x1x16xi32>
    %c0_18 = arith.constant 0 : index
    %c0_19 = arith.constant 0 : index
    %c0_20 = arith.constant 0 : index
    %22 = vector.load %arg2[%c0_18, %c0_19, %c0_20] : memref<4x1x1xi32, #tpu.memory_space<vmem>>, vector<4x1x1xi32>
    %23 = vector.broadcast %22 : vector<4x1x1xi32> to vector<4x1x16xi32>
    %24 = arith.cmpi sge, %21, %23 : vector<4x1x16xi32>
    %25 = vector.broadcast %20 : vector<4x8x1xi1> to vector<4x8x16xi1>
    %26 = vector.broadcast %24 : vector<4x1x16xi1> to vector<4x8x16xi1>
    %27 = arith.xori %25, %26 : vector<4x8x16xi1>
    %cst_21 = arith.constant 0xFF800000 : f32
    %28 = vector.broadcast %cst_21 : f32 to vector<4x8x16xf32>
    %29 = arith.select %27, %28, %16 : vector<4x8x16xi1>, vector<4x8x16xf32>
    %cst_22 = arith.constant dense<0xFF800000> : vector<4x8xf32>
    %30 = vector.multi_reduction <maximumf>, %29, %cst_22 [2] : vector<4x8x16xf32> to vector<4x8xf32>
    %31 = vector.shape_cast %30 : vector<4x8xf32> to vector<4x8x1xf32>
    %32 = vector.broadcast %31 : vector<4x8x1xf32> to vector<4x8x16xf32>
    %33 = arith.subf %29, %32 : vector<4x8x16xf32>
    %34 = math.exp %33 : vector<4x8x16xf32>
    %cst_23 = arith.constant dense<0.000000e+00> : vector<4x8xf32>
    %35 = vector.multi_reduction <add>, %34, %cst_23 [2] : vector<4x8x16xf32> to vector<4x8xf32>
    %36 = vector.shape_cast %35 : vector<4x8xf32> to vector<4x8x1xf32>
    %37 = vector.broadcast %36 : vector<4x8x1xf32> to vector<4x8x16xf32>
    %38 = arith.divf %34, %37 : vector<4x8x16xf32>
    %cst_24 = arith.constant dense<0xFF800000> : vector<4x16xf32>
    %39 = vector.multi_reduction <maximumf>, %29, %cst_24 [1] : vector<4x8x16xf32> to vector<4x16xf32>
    %40 = vector.shape_cast %39 : vector<4x16xf32> to vector<4x1x16xf32>
    %41 = vector.broadcast %40 : vector<4x1x16xf32> to vector<4x8x16xf32>
    %42 = arith.subf %29, %41 : vector<4x8x16xf32>
    %43 = math.exp %42 : vector<4x8x16xf32>
    %cst_25 = arith.constant dense<0.000000e+00> : vector<4x16xf32>
    %44 = vector.multi_reduction <add>, %43, %cst_25 [1] : vector<4x8x16xf32> to vector<4x16xf32>
    %45 = vector.shape_cast %44 : vector<4x16xf32> to vector<4x1x16xf32>
    %46 = vector.broadcast %45 : vector<4x1x16xf32> to vector<4x8x16xf32>
    %47 = arith.divf %43, %46 : vector<4x8x16xf32>
    %c0_26 = arith.constant 0 : index
    %c0_27 = arith.constant 0 : index
    %c0_28 = arith.constant 0 : index
    %48 = vector.load %arg5[%c0_26, %c0_27, %c0_28] : memref<4x8x16xf32, #tpu.memory_space<vmem>>, vector<4x8x16xf32>
    "tpu.trace_start"() <{level = 10 : i32, message = "bil,bid->bld"}> : () -> ()
    %cst_29 = arith.constant dense<0.000000e+00> : vector<4x16x16xf32>
    %49 = tpu.matmul %47, %48, %cst_29 {dimension_numbers = #tpu.dot_dimension_numbers<[1], [1], [2], [2], [0, 0, 0, 2, 1, 2], [0], [0]>} : vector<4x8x16xf32>, vector<4x8x16xf32>, vector<4x16x16xf32> -> vector<4x16x16xf32>
    "tpu.trace_stop"() : () -> ()
    %c0_30 = arith.constant 0 : index
    %c0_31 = arith.constant 0 : index
    %c0_32 = arith.constant 0 : index
    %50 = vector.load %arg6[%c0_30, %c0_31, %c0_32] : memref<4x16x32xf32, #tpu.memory_space<vmem>>, vector<4x16x32xf32>
    "tpu.trace_start"() <{level = 10 : i32, message = "bil,bld->bid"}> : () -> ()
    %cst_33 = arith.constant dense<0.000000e+00> : vector<4x8x32xf32>
    %51 = tpu.matmul %38, %50, %cst_33 {dimension_numbers = #tpu.dot_dimension_numbers<[2], [1], [1], [2], [0, 0, 0, 1, 1, 2], [0], [0]>} : vector<4x8x16xf32>, vector<4x16x32xf32>, vector<4x8x32xf32> -> vector<4x8x32xf32>
    "tpu.trace_stop"() : () -> ()
    %52 = vector.shape_cast %49 : vector<4x16x16xf32> to vector<4x1x256xf32>
    %c0_34 = arith.constant 0 : index
    %c0_35 = arith.constant 0 : index
    %c0_36 = arith.constant 0 : index
    %53 = vector.load %arg11[%c0_34, %c0_35, %c0_36] : memref<4x1x256xf32, #tpu.memory_space<vmem>>, vector<4x1x256xf32>
    tpu.vector_store %arg11[%c0_34, %c0_35, %c0_36], %52 {strides = array<i32>} : memref<4x1x256xf32, #tpu.memory_space<vmem>>, vector<4x1x256xf32>,
    %54 = vector.shape_cast %51 : vector<4x8x32xf32> to vector<4x1x256xf32>
    %c0_37 = arith.constant 0 : index
    %c0_38 = arith.constant 0 : index
    %c0_39 = arith.constant 0 : index
    %55 = vector.load %arg12[%c0_37, %c0_38, %c0_39] : memref<4x1x256xf32, #tpu.memory_space<vmem>>, vector<4x1x256xf32>
    tpu.vector_store %arg12[%c0_37, %c0_38, %c0_39], %54 {strides = array<i32>} : memref<4x1x256xf32, #tpu.memory_space<vmem>>, vector<4x1x256xf32>,
    %56 = vector.shape_cast %47 : vector<4x8x16xf32> to vector<4x1x128xf32>
    %c0_40 = arith.constant 0 : index
    %c0_41 = arith.constant 0 : index
    %c0_42 = arith.constant 0 : index
    %57 = vector.load %arg13[%c0_40, %c0_41, %c0_42] : memref<4x3x128xf32, #tpu.memory_space<vmem>>, vector<4x1x128xf32>
    tpu.vector_store %arg13[%c0_40, %c0_41, %c0_42], %56 {strides = array<i32>} : memref<4x3x128xf32, #tpu.memory_space<vmem>>, vector<4x1x128xf32>,
    %58 = vector.shape_cast %38 : vector<4x8x16xf32> to vector<4x1x128xf32>
    %c0_43 = arith.constant 0 : index
    %c1 = arith.constant 1 : index
    %c0_44 = arith.constant 0 : index
    %59 = vector.load %arg13[%c0_43, %c1, %c0_44] : memref<4x3x128xf32, #tpu.memory_space<vmem>>, vector<4x1x128xf32>
    tpu.vector_store %arg13[%c0_43, %c1, %c0_44], %58 {strides = array<i32>} : memref<4x3x128xf32, #tpu.memory_space<vmem>>, vector<4x1x128xf32>,
    %60 = vector.shape_cast %29 : vector<4x8x16xf32> to vector<4x1x128xf32>
    %c0_45 = arith.constant 0 : index
    %c2 = arith.constant 2 : index
    %c0_46 = arith.constant 0 : index
    %61 = vector.load %arg13[%c0_45, %c2, %c0_46] : memref<4x3x128xf32, #tpu.memory_space<vmem>>, vector<4x1x128xf32>
    tpu.vector_store %arg13[%c0_45, %c2, %c0_46], %60 {strides = array<i32>} : memref<4x3x128xf32, #tpu.memory_space<vmem>>, vector<4x1x128xf32>,
    return
  }
  func.func @transform_0(%arg0: i32) -> (i32, i32, i32) {
    %c0_i32 = arith.constant 0 : i32
    %c0_i32_0 = arith.constant 0 : i32
    %c0_i32_1 = arith.constant 0 : i32
    return %arg0, %c0_i32, %c0_i32_0 : i32, i32, i32
  }
  func.func @transform_1(%arg0: i32) -> (i32, i32, i32) {
    %c0_i32 = arith.constant 0 : i32
    %c0_i32_0 = arith.constant 0 : i32
    %c0_i32_1 = arith.constant 0 : i32
    return %arg0, %c0_i32, %c0_i32_0 : i32, i32, i32
  }
  func.func @transform_2(%arg0: i32) -> (i32, i32, i32) {
    %c0_i32 = arith.constant 0 : i32
    %c0_i32_0 = arith.constant 0 : i32
    %c0_i32_1 = arith.constant 0 : i32
    return %arg0, %c0_i32, %c0_i32_0 : i32, i32, i32
  }
  func.func @transform_3(%arg0: i32) -> (i32, i32, i32) {
    %c0_i32 = arith.constant 0 : i32
    %c0_i32_0 = arith.constant 0 : i32
    %c0_i32_1 = arith.constant 0 : i32
    return %arg0, %c0_i32, %c0_i32_0 : i32, i32, i32
  }
  func.func @transform_4(%arg0: i32) -> (i32, i32, i32) {
    %c0_i32 = arith.constant 0 : i32
    %c0_i32_0 = arith.constant 0 : i32
    %c0_i32_1 = arith.constant 0 : i32
    return %arg0, %c0_i32, %c0_i32_0 : i32, i32, i32
  }
  func.func @transform_5(%arg0: i32) -> (i32, i32, i32) {
    %c0_i32 = arith.constant 0 : i32
    %c0_i32_0 = arith.constant 0 : i32
    %c0_i32_1 = arith.constant 0 : i32
    return %arg0, %c0_i32, %c0_i32_0 : i32, i32, i32
  }
  func.func @transform_6(%arg0: i32) -> (i32, i32) {
    %c0_i32 = arith.constant 0 : i32
    %c0_i32_0 = arith.constant 0 : i32
    %c0_i32_1 = arith.constant 0 : i32
    return %c0_i32, %c0_i32_0 : i32, i32
  }
  func.func @transform_7(%arg0: i32) -> (i32, i32) {
    %c0_i32 = arith.constant 0 : i32
    %c0_i32_0 = arith.constant 0 : i32
    %c0_i32_1 = arith.constant 0 : i32
    return %c0_i32, %c0_i32_0 : i32, i32
  }
  func.func @transform_8(%arg0: i32) -> (i32, i32) {
    %c0_i32 = arith.constant 0 : i32
    %c0_i32_0 = arith.constant 0 : i32
    %c0_i32_1 = arith.constant 0 : i32
    return %c0_i32, %c0_i32_0 : i32, i32
  }
  func.func @transform_9(%arg0: i32) -> (i32, i32) {
    %c0_i32 = arith.constant 0 : i32
    %c0_i32_0 = arith.constant 0 : i32
    %c0_i32_1 = arith.constant 0 : i32
    return %c0_i32, %c0_i32_0 : i32, i32
  }
  func.func @transform_10(%arg0: i32) -> (i32, i32, i32) {
    %c0_i32 = arith.constant 0 : i32
    %c0_i32_0 = arith.constant 0 : i32
    %c0_i32_1 = arith.constant 0 : i32
    return %arg0, %c0_i32, %c0_i32_0 : i32, i32, i32
  }
  func.func @transform_11(%arg0: i32) -> (i32, i32, i32) {
    %c0_i32 = arith.constant 0 : i32
    %c0_i32_0 = arith.constant 0 : i32
    %c0_i32_1 = arith.constant 0 : i32
    return %arg0, %c0_i32, %c0_i32_0 : i32, i32, i32
  }
  func.func @transform_12(%arg0: i32) -> (i32, i32, i32) {
    %c0_i32 = arith.constant 0 : i32
    %c0_i32_0 = arith.constant 0 : i32
    %c0_i32_1 = arith.constant 0 : i32
    return %arg0, %c0_i32, %c0_i32_0 : i32, i32, i32
  }
}

</mosaic_0001>

<bundles_post_ra>
// kernel: tpu_custom_call.1
= control target key start
LH: loop header
LB: loop body
LE: loop exit
PB: predicated region body
PF: predicated region fallthrough
CT: control target
= control target key end

     0   :  { %18 = vsyncpa [#allocation3], 0  ;;  %s4556_s0 = inlined_call_operand.vmem [shape: s32[4,1,1], index: 0, kind: input, shape index: {}]   ;;  %s4557_s1 = inlined_call_operand.vmem [shape: s32[4,1,1], index: 1, kind: input, shape index: {}]   ;;  %s4558_s2 = inlined_call_operand.hbm [shape: f32[4,8,128], index: 2, kind: input, shape index: {}]   ;;  %s4559_s3 = inlined_call_operand.hbm [shape: f32[4,16,128], index: 3, kind: input, shape index: {}]   ;;  %s4560_s4 = inlined_call_operand.hbm [shape: f32[4,8,16], index: 4, kind: input, shape index: {}]   ;;  %s4561_s5 = inlined_call_operand.hbm [shape: f32[4,16,32], index: 5, kind: input, shape index: {}]   ;;  %s4562_s6 = inlined_call_operand.hbm [shape: f32[128,128], index: 6, kind: input, shape index: {}]   ;;  %s4563_s7 = inlined_call_operand.vmem [shape: f32[1,128], index: 7, kind: input, shape index: {}]   ;;  %s4564_s8 = inlined_call_operand.hbm [shape: f32[128,128], index: 8, kind: input, shape index: {}]   ;;  %s4565_s9 = inlined_call_operand.vmem [shape: f32[1,128], index: 9, kind: input, shape index: {}]   ;;  %s4566_s10 = inlined_call_operand.hbm [shape: f32[4,1,256], index: 10, kind: output, shape index: {0}]   ;;  %s4567_s11 = inlined_call_operand.hbm [shape: f32[4,1,256], index: 11, kind: output, shape index: {1}]   ;;  %s4568_s12 = inlined_call_operand.vmem [shape: f32[4,3,128], index: 12, kind: output, shape index: {2}]  }
   0x1   :  { %19 = vsyncpa [#allocation6], 0 }
   0x2   :  { %20 = vsyncpa [#allocation9], 0 }
   0x3   :  { %21 = vsyncpa [#allocation12], 0 }
   0x4   :  { %22 = vsyncpa [#allocation4], 0 }
   0x5   :  { %23 = vsyncpa [#allocation15], 0  ;;  %s45_s23 = sshll.u32 %s4559_s3, 4  ;;  %s3109_s24 = smov [#allocation5]   ;;  %s46_s23 = int_to_ptr.hbm [resolvable:$true] %s45_s23 }
   0x6   :  { %s47_s25 = sshll.u32 %s3109_s24, 4  ;;  %s71_s28 = sshll.u32 %s4561_s5, 4  ;;  %s48_s25 = int_to_ptr.vmem [resolvable:$true] %s47_s25  ;;  %s72_s28 = int_to_ptr.hbm [resolvable:$true] %s71_s28 }
   0x7   :  { %s3110_s29 = smov 128   ;;  %s3111_s30 = smov 8  }
   0x8   :  { %53 = dma.hbm_to_vmem [thread:$0]  %s46_s23, 1024, %s48_s25, [#allocation6], %s3110_s29, %s3110_s29, %s3111_s30  }
   0x9   :  { %s3112_s13 = smov [#allocation8]   ;;  %s32_s3 = sshll.u32 %s4558_s2, 4  ;;  %s33_s3 = int_to_ptr.hbm [resolvable:$true] %s32_s3 }
   0xa   :  { %s73_s14 = sshll.u32 %s3112_s13, 4  ;;  %s58_s18 = sshll.u32 %s4560_s4, 4  ;;  %s74_s14 = int_to_ptr.vmem [resolvable:$true] %s73_s14  ;;  %s59_s18 = int_to_ptr.hbm [resolvable:$true] %s58_s18 }
   0xb   :  { %79 = dma.hbm_to_vmem [thread:$0]  %s72_s28, 1024, %s74_s14, [#allocation9], %s3110_s29, %s3110_s29, %s3111_s30  }
   0xc   :  { %s3113_s19 = smov [#allocation2]   ;;  %s3114_s21 = smov [#allocation7]  }
   0xd   :  { %s34_s20 = sshll.u32 %s3113_s19, 4  ;;  %s60_s2 = sshll.u32 %s3114_s21, 4  ;;  %s35_s20 = int_to_ptr.vmem [resolvable:$true] %s34_s20  ;;  %s61_s2 = int_to_ptr.vmem [resolvable:$true] %s60_s2 }
   0xe   :  { %40 = dma.hbm_to_vmem [thread:$0]  %s33_s3, 512, %s35_s20, [#allocation3], %s3110_s29, %s3110_s29, %s3111_s30  }
   0xf   :  { %s84_s24 = sshll.u32 %s4562_s6, 4  ;;  %s99_s26 = sshll.u32 %s4564_s8, 4  ;;  %s85_s24 = int_to_ptr.hbm [resolvable:$true] %s84_s24  ;;  %s100_s26 = int_to_ptr.hbm [resolvable:$true] %s99_s26 }
  0x10   :  { %66 = dma.hbm_to_vmem [thread:$0]  %s59_s18, 512, %s61_s2, [#allocation6], %s3110_s29, %s3110_s29, %s3111_s30  }
  0x11   :  { %s3115_s27 = smov [#allocation10]   ;;  %s3116_s13 = smov [#allocation11]  }
  0x12   :  { %s86_s28 = sshll.u32 %s3115_s27, 4  ;;  %s101_s6 = sshll.u32 %s3116_s13, 4  ;;  %s87_s28 = int_to_ptr.vmem [resolvable:$true] %s86_s28  ;;  %s102_s6 = int_to_ptr.vmem [resolvable:$true] %s101_s6 }
  0x13   :  { %92 = dma.hbm_to_vmem [thread:$0]  %s85_s24, 2048, %s87_s28, [#allocation9], %s3110_s29, %s3110_s29, %s3111_s30  }
  0x14   :  { %107 = dma.hbm_to_vmem [thread:$0]  %s100_s26, 2048, %s102_s6, [#allocation12], %s3110_s29, %s3110_s29, %s3111_s30  }
  0x15   :  { %3097 = dma.done.wait [#allocation3], 512  }
  0x16   :  { %3098 = vsyncadd [#allocation3], 4294966784 }
  0x17   :  { %3099 = dma.done.wait [#allocation6], 1536  }
  0x18   :  { %3100 = vsyncadd [#allocation6], 4294965760 }
  0x19   :  { %3101 = dma.done.wait [#allocation9], 3072  }
  0x1a   :  { %3102 = vsyncadd [#allocation9], 4294964224 }
  0x1b   :  { %3103 = dma.done.wait [#allocation12], 2048  }
  0x1c   :  { %3104 = vsyncadd [#allocation12], 4294965248  ;;  %v210_v0 = vld [vmem:[#allocation11 + $0x78] sm:$0xff]  ;;  %v209_v1 = vld [vmem:[#allocation11 + $0x70] sm:$0xff]  ;;  %v3117_v45 = vmov 0   ;;  %v4569_v47 = vlaneseq  ;;  %vm412_vm7 = vcmask 130048  }
  0x1d   :  { %215 = vmatpush.msra.mxu1 %v210_v0  ;;  %v208_v2 = vld [vmem:[#allocation11 + $0x68] sm:$0xff]  ;;  %v161_v3 = vld [vmem:[#allocation10 + $0x78] sm:$0xff]  ;;  %v160_v4 = vld [vmem:[#allocation10 + $0x70] sm:$0xff]  ;;  %2864 = vset.pattern.permute.xlu0 %v3117_v45  ;;  %vm983_vm8 = vcmask 1047556   ;;  %s3122_s25 = smov 64   ;;  %s3123_s26 = smov 80  }
  0x1e   :  { %166 = vmatpush.msra.mxu0 %v161_v3  ;;  %v207_v5 = vld [vmem:[#allocation11 + $0x60] sm:$0xff]  ;;  %v159_v6 = vld [vmem:[#allocation10 + $0x68] sm:$0xff]  ;;  %v206_v7 = vld [vmem:[#allocation11 + $0x58] sm:$0xff]  ;;  %2865 = vset.pattern.permute.xlu1 %v3117_v45  ;;  %v337_v49 = vshrl.u32 %v4569_v47, 7  ;;  %s3124_s27 = smov 112   ;;  %s3125_s28 = smov 48  }
  0x1f   :  { %216 = vmatpush.msra.mxu1 %v209_v1  ;;  %v158_v8 = vld [vmem:[#allocation10 + $0x60] sm:$0xff]  ;;  %v205_v9 = vld [vmem:[#allocation11 + $0x50] sm:$0xff]  ;;  %v157_v10 = vld [vmem:[#allocation10 + $0x58] sm:$0xff]  ;;  %2866 = vset.pattern.permute.xlu2 %v3117_v45  ;;  %s3126_s13 = smov 96   ;;  %s2792_s22 = sshll.u32 %s4566_s10, 4  ;;  %s2793_s22 = int_to_ptr.hbm [resolvable:$true] %s2792_s22 }
  0x20   :  { %167 = vmatpush.msra.mxu0 %v160_v4  ;;  %v204_v11 = vld [vmem:[#allocation11 + $0x48] sm:$0xff]  ;;  %v156_v12 = vld [vmem:[#allocation10 + $0x50] sm:$0xff]  ;;  %v203_v13 = vld [vmem:[#allocation11 + $0x40] sm:$0xff]  ;;  %s3128_s10 = smov 2   ;;  %s2805_s29 = sshll.u32 %s4567_s11, 4  ;;  %s2806_s29 = int_to_ptr.hbm [resolvable:$true] %s2805_s29 }
  0x21   :  { %217 = vmatpush.msra.mxu1 %v208_v2  ;;  %v155_v14 = vld [vmem:[#allocation10 + $0x48] sm:$0xff]  ;;  %v202_v15 = vld [vmem:[#allocation11 + $0x38] sm:$0xff]  ;;  %v154_v16 = vld [vmem:[#allocation10 + $0x40] sm:$0xff] }
  0x22   :  { %168 = vmatpush.msra.mxu0 %v159_v6  ;;  %v201_v17 = vld [vmem:[#allocation11 + $0x30] sm:$0xff]  ;;  %v153_v18 = vld [vmem:[#allocation10 + $0x38] sm:$0xff]  ;;  %v200_v19 = vld [vmem:[#allocation11 + $0x28] sm:$0xff] }
  0x23   :  { %218 = vmatpush.msra.mxu1 %v207_v5  ;;  %v152_v20 = vld [vmem:[#allocation10 + $0x30] sm:$0xff]  ;;  %v199_v21 = vld [vmem:[#allocation11 + $0x20] sm:$0xff]  ;;  %v151_v22 = vld [vmem:[#allocation10 + $0x28] sm:$0xff] }
  0x24   :  { %169 = vmatpush.msra.mxu0 %v158_v8  ;;  %v198_v23 = vld [vmem:[#allocation11 + $0x18] sm:$0xff]  ;;  %v150_v24 = vld [vmem:[#allocation10 + $0x20] sm:$0xff]  ;;  %v197_v25 = vld [vmem:[#allocation11 + $0x10] sm:$0xff] }
  0x25   :  { %219 = vmatpush.msra.mxu1 %v206_v7  ;;  %v149_v26 = vld [vmem:[#allocation10 + $0x18] sm:$0xff]  ;;  %v196_v27 = vld [vmem:[#allocation11 + $0x8] sm:$0xff]  ;;  %v148_v28 = vld [vmem:[#allocation10 + $0x10] sm:$0xff] }
  0x26   :  { %170 = vmatpush.msra.mxu0 %v157_v10  ;;  %v195_v29 = vld [vmem:[#allocation11] sm:$0xff]  ;;  %v147_v30 = vld [vmem:[#allocation10 + $0x8] sm:$0xff]  ;;  %v140_v36 = vld [vmem:[#allocation5 + $0x10] sm:$0xff] }
  0x27   :  { %220 = vmatpush.msra.mxu1 %v205_v9  ;;  %v138_v31 = vld [vmem:[#allocation5] sm:$0xff]  ;;  %v139_v34 = vld [vmem:[#allocation5 + $0x8] sm:$0xff]  ;;  %v136_v37 = vld [vmem:[#allocation2 + $0x10] sm:$0xff] }
  0x28   :  { %171 = vmatpush.msra.mxu0 %v156_v12  ;;  %v146_v32 = vld [vmem:[#allocation10] sm:$0xff]  ;;  %v135_v35 = vld [vmem:[#allocation2 + $0x8] sm:$0xff]  ;;  %v141_v38 = vld [vmem:[#allocation5 + $0x18] sm:$0xff] }
  0x29   :  { %221 = vmatpush.msra.mxu1 %v204_v11  ;;  %v134_v33 = vld [vmem:[#allocation2] sm:$0xff]  ;;  %v137_v39 = vld [vmem:[#allocation2 + $0x18] sm:$0xff]  ;;  %v143_v41 = vld [vmem:[#allocation5 + $0x28] sm:$0xff] }
  0x2a   :  { %172 = vmatpush.msra.mxu0 %v155_v14  ;;  %v142_v40 = vld [vmem:[#allocation5 + $0x20] sm:$0xff]  ;;  %v144_v42 = vld [vmem:[#allocation5 + $0x30] sm:$0xff]  ;;  %v145_v43 = vld [vmem:[#allocation5 + $0x38] sm:$0xff] }
  0x2b   :  { %222 = vmatpush.msra.mxu1 %v203_v13  ;;  %v352_v44 = vld [vmem:[%s4557_s1] sm:$0x1]  ;;  %v353_v46 = vld [vmem:[%s4557_s1 + $0x1] sm:$0x1]  ;;  %v354_v48 = vld [vmem:[%s4557_s1 + $0x2] sm:$0x1] }
  0x2c   :  { %173 = vmatpush.msra.mxu0 %v154_v16  ;;  %357 = vperm.xlu0 %2864, %v352_v44   ;;  %v2869_v50 = vld [vmem:[%s4556_s0 + $0x2] ss:$0 sm:$0xff]  ;;  %v2867_v53 = vld [vmem:[%s4565_s9] ss:$0 sm:$0xff]  ;;  %v2871_v63 = vld [vmem:[%s4556_s0 + $0x1] ss:$0 sm:$0xff] }
  0x2d   :  { %223 = vmatpush.msra.mxu1 %v202_v15  ;;  %365 = vperm.xlu1 %2865, %v354_v48   ;;  %vm348_vm0 = vcmp.ge.s32.totalorder %v337_v49, %v2869_v50  ;;  %v2868_v56 = vld [vmem:[%s4563_s7] ss:$0 sm:$0xff]  ;;  %vm347_vm2 = vcmp.ge.s32.totalorder %v337_v49, %v2871_v63  ;;  %v355_v7 = vld [vmem:[%s4557_s1 + $0x3] sm:$0x1]  ;;  %s3121_s1 = smov 32   ;;  %s3127_s7 = smov [#allocation13]  }
  0x2e   :  { %174 = vmatpush.msra.mxu0 %v153_v18  ;;  %v378_v51 = vsel %vm348_vm0, 1, %v3117_v45  ;;  %v2870_v59 = vld [vmem:[%s4556_s0] ss:$0 sm:$0xff]  ;;  %v377_v1 = vsel %vm347_vm2, 1, %v3117_v45  ;;  %v2872_v8 = vld [vmem:[%s4556_s0 + $0x3] ss:$0 sm:$0xff] }
  0x2f   :  { %224 = vmatpush.msra.mxu1 %v201_v17  ;;  %vm346_vm1 = vcmp.ge.s32.totalorder %v337_v49, %v2870_v59  ;;  %vm349_vm3 = vcmp.ge.s32.totalorder %v337_v49, %v2872_v8  ;;  %s3120_s0 = smov 16   ;;  %s2790_s23 = sshll.u32 %s3127_s7, 4  ;;  %s2791_s23 = int_to_ptr.vmem [resolvable:$true] %s2790_s23 }
  0x30   :  { %175 = vmatpush.msra.mxu0 %v152_v20  ;;  %v376_v62 = vsel %vm346_vm1, 1, %v3117_v45  ;;  %v379_v10 = vsel %vm349_vm3, 1, %v3117_v45 }
  0x31   :  { %225 = vmatpush.msra.mxu1 %v200_v19  ;;  %381 = vperm.xlu2 %2866, %v376_v62  }
  0x32   :  { %176 = vmatpush.msra.mxu0 %v151_v22 }
  0x33   :  { %226 = vmatpush.msra.mxu1 %v199_v21 }
  0x34   :  { %177 = vmatpush.msra.mxu0 %v150_v24  ;;  %361 = vperm.xlu0 %2864, %v353_v46  }
  0x35   :  { %227 = vmatpush.msra.mxu1 %v198_v23  ;;  %369 = vperm.xlu1 %2865, %v355_v7   ;;  %v3263_v23 = vand.u32 127, %v4569_v47 }
  0x36   :  { %178 = vmatpush.msra.mxu0 %v149_v26 }
  0x37   :  { %228 = vmatpush.msra.mxu1 %v197_v25  ;;  %v3118_v25 = vmov 1983009808  }
  0x38   :  { %179 = vmatpush.msra.mxu0 %v148_v28  ;;  %v986_v26 = vunpack.c.l.s4 %v3118_v25 }
  0x39   :  { %229 = vmatpush.msra.mxu1 %v196_v27  ;;  %384 = vperm.xlu2 %2866, %v377_v1   ;;  %v3119_v27 = vmov 1934713408  }
  0x3a   :  { %180 = vmatpush.msra.mxu0 %v147_v30  ;;  %v996_v28 = vunpack.c.l.s4 %v3119_v27 }
  0x3b   :  { %230 = vmatpush.msra.mxu1 %v195_v29  ;;  %v3266_v29 = vunpack.c.0.s8 %v986_v26 }
  0x3c   :  { %231 = vmatmul.f32.vlgmr.msra.gmra.mxu1 %v138_v31  ;;  %181 = vmatpush.msra.mxu0 %v146_v32  ;;  %v3268_v31 = vunpack.c.0.s8 %v996_v28 }
  0x3d   :  { %182 = vmatmul.f32.vlgmr.msra.gmra.mxu0 %v134_v33  ;;  %387 = vperm.xlu0 %2864, %v378_v51  }
  0x3e   :  { %390 = vperm.xlu1 %2865, %v379_v10  }
  0x44   :  { %234 = vmatmul.f32.gmra.mxu1 %v139_v34 }
  0x45   :  { %185 = vmatmul.f32.gmra.mxu0 %v135_v35 }
  0x4c   :  { %237 = vmatmul.f32.gmra.mxu1 %v140_v36 }
  0x4d   :  { %188 = vmatmul.f32.gmra.mxu0 %v136_v37 }
  0x54   :  { %240 = vmatmul.f32.gmra.mxu1 %v141_v38 }
  0x55   :  { %191 = vmatmul.f32.gmra.mxu0 %v137_v39 }
  0x5c   :  { %243 = vmatmul.f32.gmra.mxu1 %v142_v40 }
  0x64   :  { %246 = vmatmul.f32.gmra.mxu1 %v143_v41 }
  0x6c   :  { %249 = vmatmul.f32.gmra.mxu1 %v144_v42 }
  0x74   :  { %252 = vmatmul.f32.gmra.mxu1 %v145_v43 }
  0x8b   :  { %v382_v24 = vpop.permute.xlu2 %381 }
  0x8c   :  { %vm392_vm4 = vcmp.eq.s32.totalorder %v382_v24, 1 }
  0x93   :  { %v385_v49 = vpop.permute.xlu2 %384 }
  0x94   :  { %vm393_vm9 = vcmp.eq.s32.totalorder %v385_v49, 1 }
  0x9e   :  { %v358_v21 = vpop.permute.xlu0 %357 }
  0x9f   :  { %v359_v22 = vperm.slane %v358_v21, 0  ;;  %v366_v8 = vpop.permute.xlu1 %365 }
  0xa1   :  { %vm372_vm5 = vcmp.ge.s32.totalorder %v3263_v23, %v359_v22 }
  0xa2   :  { %vm404_vm6 = vmxor %vm392_vm4, %vm372_vm5 }
  0xa6   :  { %v362_v43 = vpop.permute.xlu0 %361 }
  0xa7   :  { %v363_v46 = vperm.slane %v362_v43, 0 }
  0xa9   :  { %vm373_vm10 = vcmp.ge.s32.totalorder %v3263_v23, %v363_v46 }
  0xaa   :  { %vm405_vm11 = vmxor %vm393_vm9, %vm373_vm10  ;;  %vm1520_vm9 = vcmask 392192   ;;  %vm1525_vm10 = vcmask 523264  }
  0xb9   :  { %v232_v52 = vpop.f32.mrf.mxu1 }
  0xba   :  { %v183_v57 = vpop.f32.mrf.mxu0  ;;  %v233_v58 = vadd.f32 %v2867_v53, %v232_v52 }
  0xbb   :  { %v184_v60 = vadd.f32 %v2868_v56, %v183_v57 }
  0xc1   :  { %v235_v54 = vpop.f32.mrf.mxu1 }
  0xc2   :  { %v236_v55 = vadd.f32 %v2867_v53, %v235_v54  ;;  %v186_v4 = vpop.f32.mrf.mxu0 }
  0xc3   :  { %v187_v5 = vadd.f32 %v2868_v56, %v186_v4 }
  0xc4   :  { %270 = vmatpush.xpose.msra.mxu2 %v236_v55 }
  0xc8   :  { %271 = vmatpush.xpose.msra.mxu2 %v233_v58 }
  0xc9   :  { %v238_v61 = vpop.f32.mrf.mxu1 }
  0xca   :  { %v239_v3 = vadd.f32 %v2867_v53, %v238_v61  ;;  %v189_v13 = vpop.f32.mrf.mxu0 }
  0xcb   :  { %272 = vmatmul.f32.vlgmr.msra.gmra.mxu2 %v184_v60  ;;  %v190_v14 = vadd.f32 %v2868_v56, %v189_v13  ;;  %v388_v13 = vpop.permute.xlu0 %387 }
  0xcc   :  { %vm394_vm12 = vcmp.eq.s32.totalorder %v388_v13, 1 }
  0xd1   :  { %v241_v0 = vpop.f32.mrf.mxu1 }
  0xd2   :  { %v242_v2 = vadd.f32 %v2867_v53, %v241_v0  ;;  %v192_v19 = vpop.f32.mrf.mxu0 }
  0xd3   :  { %v193_v20 = vadd.f32 %v2868_v56, %v192_v19 }
  0xd4   :  { %290 = vmatpush.xpose.msra.mxu3 %v242_v2 }
  0xd8   :  { %291 = vmatpush.xpose.msra.mxu3 %v239_v3 }
  0xd9   :  { %v244_v6 = vpop.f32.mrf.mxu1 }
  0xda   :  { %v245_v12 = vadd.f32 %v2867_v53, %v244_v6 }
  0xdb   :  { %292 = vmatmul.f32.vlgmr.msra.gmra.mxu3 %v187_v5 }
  0xe1   :  { %v247_v9 = vpop.f32.mrf.mxu1 }
  0xe2   :  { %v248_v11 = vadd.f32 %v2867_v53, %v247_v9 }
  0xe4   :  { %310 = vmatpush.xpose.msrb.mxu2 %v248_v11 }
  0xe8   :  { %311 = vmatpush.xpose.msrb.mxu2 %v245_v12  ;;  %v367_v12 = vperm.slane %v366_v8, 0 }
  0xe9   :  { %v250_v15 = vpop.f32.mrf.mxu1 }
  0xea   :  { %v251_v18 = vadd.f32 %v2867_v53, %v250_v15  ;;  %vm374_vm13 = vcmp.ge.s32.totalorder %v3263_v23, %v367_v12 }
  0xeb   :  { %312 = vmatmul.f32.vlgmr.msrb.gmra.mxu2 %v190_v14  ;;  %vm406_vm14 = vmxor %vm394_vm12, %vm374_vm13  ;;  %vm1535_vm12 = vcmask 785408   ;;  %vm1540_vm13 = vcmask 916480  }
  0xf1   :  { %v253_v16 = vpop.f32.mrf.mxu1 }
  0xf2   :  { %v254_v17 = vadd.f32 %v2867_v53, %v253_v16 }
  0xf4   :  { %330 = vmatpush.xpose.msrb.mxu3 %v254_v17 }
  0xf8   :  { %331 = vmatpush.xpose.msrb.mxu3 %v251_v18 }
  0xfb   :  { %332 = vmatmul.f32.vlgmr.msrb.gmra.mxu3 %v193_v20 }
 0x14e   :  { %v273_v30 = vpop.f32.mrf.mxu2 }
 0x14f   :  { %v3270_v32 = vsel %vm404_vm6, -inf, %v273_v30  ;;  %vm1515_vm6 = vcmask 261120  }
 0x150   :  { %v2490_v33 = vrot.slane %v3270_v32, 4  ;;  %v2495_v34 = vperm.slane %v3270_v32, %v3266_v29  ;;  %v413_v35 = vsel %vm412_vm7, %v3270_v32, -inf }
 0x151   :  { %414 = vmax.xlane.f32.xlu2 %v413_v35  ;;  %v509_v55 = vrot.slane %v413_v35, 4 }
 0x152   :  { %v3278_v36 = vperm.slane %v2495_v34, %v3268_v31  ;;  %v2500_v37 = vrot.slane %v2495_v34, 4  ;;  %v2491_v38 = vsel %vm983_vm8, 0.0, %v2490_v33 }
 0x153   :  { %v2499_v39 = vperm.slane %v2491_v38, %v3266_v29  ;;  %v510_v60 = vmax.f32 %v413_v35, %v509_v55 }
 0x154   :  { %v2520_v40 = vrot.slane %v3278_v36, 4  ;;  %v2501_v41 = vsel %vm983_vm8, 0.0, %v2500_v37 }
 0x155   :  { %v2509_v42 = vperm.slane %v2501_v41, %v3268_v31  ;;  %v2515_v45 = vperm.slane %v2499_v39, %v3268_v31  ;;  %v2510_v48 = vrot.slane %v2499_v39, 4  ;;  %v511_v2 = vrot.slane %v510_v60, 2 }
 0x156   :  { %v2521_v44 = vsel %vm983_vm8, 0.0, %v2520_v40 }
 0x157   :  { %2646 = vrot.lane.b32.xlu1 %v2521_v44, %s3120_s0  ;;  %2662 = vrot.lane.b32.xlu0 %v2509_v42, %s3121_s1  ;;  %v2524_v50 = vrot.slane %v2515_v45, 4  ;;  %v2511_v51 = vsel %vm983_vm8, 0.0, %v2510_v48  ;;  %v2522_v62 = vrot.slane %v2509_v42, 4  ;;  %v512_v7 = vmax.f32 %v510_v60, %v511_v2 }
 0x158   :  { %v2519_v54 = vperm.slane %v2511_v51, %v3268_v31 }
 0x159   :  { %v2525_v53 = vsel %vm983_vm8, 0.0, %v2524_v50  ;;  %v2523_v4 = vsel %vm983_vm8, 0.0, %v2522_v62  ;;  %v513_v11 = vrot.slane %v512_v7, 1 }
 0x15a   :  { %v2526_v58 = vrot.slane %v2519_v54, 4 }
 0x15b   :  { %v514_v15 = vmax.f32 %v512_v7, %v513_v11 }
 0x15c   :  { %v2527_v0 = vsel %vm983_vm8, 0.0, %v2526_v58  ;;  %v370_v58 = vpop.permute.xlu1 %369 }
 0x15d   :  { %v533_v18 = vsub.f32 %v3270_v32, %v514_v15 }
 0x15e   :  { %v293_v52 = vpop.f32.mrf.mxu3 }
 0x15f   :  { %v3293_v56 = vsel %vm405_vm11, -inf, %v293_v52  ;;  %2694 = vrot.lane.b32.xlu1 %v2515_v45, %s3122_s25  ;;  %2710 = vrot.lane.b32.xlu0 %v2525_v53, %s3123_s26  ;;  %v537_v21 = vmul.f32 1.442695, %v533_v18  ;;  %vm1530_vm11 = vcmask 654336  }
 0x160   :  { %v3299_v57 = vperm.slane %v3293_v56, %v3266_v29  ;;  %v2528_v61 = vrot.slane %v3293_v56, 4  ;;  %v416_v22 = vsel %vm412_vm7, %v3293_v56, -inf }
 0x161   :  { %v515_v26 = vrot.slane %v416_v22, 4  ;;  %2873 = vpow2.f32 %v537_v21 }
 0x162   :  { %v2538_v59 = vrot.slane %v3299_v57, 4  ;;  %v2529_v3 = vsel %vm983_vm8, 0.0, %v2528_v61  ;;  %v3352_v50 = vperm.slane %v3299_v57, %v3268_v31 }
 0x163   :  { %v2537_v6 = vperm.slane %v2529_v3, %v3266_v29  ;;  %v516_v30 = vmax.f32 %v416_v22, %v515_v26 }
 0x164   :  { %v2539_v63 = vsel %vm983_vm8, 0.0, %v2538_v59  ;;  %v2558_v53 = vrot.slane %v3352_v50, 4  ;;  %v391_v2 = vpop.permute.xlu1 %390 }
 0x165   :  { %v2547_v1 = vperm.slane %v2539_v63, %v3268_v31  ;;  %v2548_v10 = vrot.slane %v2537_v6, 4  ;;  %v2553_v19 = vperm.slane %v2537_v6, %v3268_v31  ;;  %v517_v37 = vrot.slane %v516_v30, 2 }
 0x166   :  { %v2559_v59 = vsel %vm983_vm8, 0.0, %v2558_v53  ;;  %vm395_vm15 = vcmp.eq.s32.totalorder %v391_v2, 1 }
 0x167   :  { %2742 = vrot.lane.b32.xlu1 %v2527_v0, %s3124_s27  ;;  %v2560_v5 = vrot.slane %v2547_v1, 4  ;;  %v2549_v14 = vsel %vm983_vm8, 0.0, %v2548_v10  ;;  %v2562_v25 = vrot.slane %v2553_v19, 4  ;;  %v3337_v35 = vpop.eup %2873  ;;  %v518_v41 = vmax.f32 %v516_v30, %v517_v37 }
 0x168   :  { %v3317_v16 = vperm.slane %v2549_v14, %v3268_v31  ;;  %v545_v38 = vsel %vm412_vm7, %v3337_v35, 0.0 }
 0x169   :  { %2678 = vrot.lane.b32.xlu2 %v2523_v4, %s3125_s28  ;;  %v2561_v9 = vsel %vm983_vm8, 0.0, %v2560_v5  ;;  %v2563_v27 = vsel %vm983_vm8, 0.0, %v2562_v25  ;;  %v546_v42 = vrot.slane %v545_v38, 4  ;;  %v519_v44 = vrot.slane %v518_v41, 1 }
 0x16b   :  { %v547_v45 = vadd.f32 %v546_v42, %v545_v38  ;;  %v520_v48 = vmax.f32 %v518_v41, %v519_v44 }
 0x16d   :  { %v548_v49 = vrot.slane %v547_v45, 2  ;;  %v534_v51 = vsub.f32 %v3293_v56, %v520_v48 }
 0x16e   :  { %v313_v17 = vpop.f32.mrf.mxu2 }
 0x16f   :  { %2680 = vrot.lane.b32.xlu1 %v2561_v9, %s3125_s28  ;;  %v3323_v20 = vsel %vm406_vm14, -inf, %v313_v17  ;;  %v549_v52 = vadd.f32 %v548_v49, %v547_v45 }
 0x170   :  { %v2571_v24 = vperm.slane %v3323_v20, %v3266_v29  ;;  %v2566_v33 = vrot.slane %v3323_v20, 4  ;;  %v419_v62 = vsel %vm412_vm7, %v3323_v20, -inf }
 0x171   :  { %2726 = vrot.lane.b32.xlu2 %v2519_v54, %s3126_s13  ;;  %v539_v54 = vmul.f32 1.442695, %v534_v51  ;;  %v550_v55 = vrot.slane %v549_v52, 1  ;;  %v521_v44 = vrot.slane %v419_v62, 4 }
 0x172   :  { %v3332_v28 = vperm.slane %v2571_v24, %v3268_v31  ;;  %v2567_v40 = vsel %vm983_vm8, 0.0, %v2566_v33  ;;  %v2576_v60 = vrot.slane %v2571_v24, 4 }
 0x173   :  { %v2575_v43 = vperm.slane %v2567_v40, %v3266_v29  ;;  %2875 = vpow2.f32 %v539_v54  ;;  %v551_v61 = vadd.f32 %v550_v55, %v549_v52  ;;  %v522_v51 = vmax.f32 %v419_v62, %v521_v44 }
 0x174   :  { %v2596_v34 = vrot.slane %v3332_v28, 4  ;;  %v2577_v57 = vsel %vm983_vm8, 0.0, %v2576_v60 }
 0x175   :  { %v3346_v46 = vperm.slane %v2575_v43, %v3268_v31  ;;  %2877 = vrcp.f32 %v551_v61  ;;  %v2585_v0 = vperm.slane %v2577_v57, %v3268_v31  ;;  %v2586_v9 = vrot.slane %v2575_v43, 4 }
 0x176   :  { %v2597_v39 = vsel %vm983_vm8, 0.0, %v2596_v34  ;;  %v584_v26 = vand.u32 2147483648, %v551_v61  ;;  %vm578_vm3 = vweird.f32 %v551_v61  ;;  %v582_v30 = vand.u32 2147483647, %v551_v61 }
 0x177   :  { %2728 = vrot.lane.b32.xlu1 %v3317_v16, %s3126_s13  ;;  %v2598_v4 = vrot.slane %v2585_v0, 4  ;;  %v2587_v14 = vsel %vm983_vm8, 0.0, %v2586_v9  ;;  %v2600_v37 = vrot.slane %v3346_v46, 4 }
 0x178   :  { %v585_v38 = vor.u32 1.1754944e-38, %v584_v26  ;;  %vm583_vm5 = vcmp.eq.f32.partialorder %v582_v30, 8.507059e+37 }
 0x179   :  { %2664 = vrot.lane.b32.xlu2 %v2547_v1, %s3121_s1  ;;  %v3361_v63 = vpop.eup %2875  ;;  %v371_v1 = vperm.slane %v370_v58, 0  ;;  %v2599_v8 = vsel %vm983_vm8, 0.0, %v2598_v4  ;;  %v2601_v41 = vsel %vm983_vm8, 0.0, %v2600_v37 }
 0x17a   :  { %v552_v3 = vsel %vm412_vm7, %v3361_v63, 0.0 }
 0x17b   :  { %v2878_v5 = vpop.eup %2877  ;;  %vm375_vm0 = vcmp.ge.s32.totalorder %v3263_v23, %v371_v1  ;;  %v553_v6 = vrot.slane %v552_v3, 4  ;;  %v3376_v23 = vperm.slane %v2587_v14, %v3268_v31 }
 0x17c   :  { %vm407_vm1 = vmxor %vm395_vm15, %vm375_vm0  ;;  %v574_v10 = vmul.f32 %v2878_v5, %v551_v61  ;;  %vm579_vm2 = vweird.f32 %v2878_v5 }
 0x17d   :  { %v554_v11 = vadd.f32 %v553_v6, %v552_v3  ;;  %vm580_vm4 = vmor %vm578_vm3, %vm579_vm2 }
 0x17e   :  { %v333_v7 = vpop.f32.mrf.mxu3  ;;  %v575_v15 = vsub.f32 1.0, %v574_v10 }
 0x17f   :  { %v3370_v12 = vsel %vm407_vm1, -inf, %v333_v7  ;;  %v555_v17 = vrot.slane %v554_v11, 2 }
 0x180   :  { %v2609_v13 = vperm.slane %v3370_v12, %v3266_v29  ;;  %v3383_v25 = vsel %vm412_vm7, %v3370_v12, -inf }
 0x181   :  { %2712 = vrot.lane.b32.xlu2 %v2563_v27, %s3123_s26  ;;  %v556_v21 = vadd.f32 %v555_v17, %v554_v11 }
 0x182   :  { %v2614_v18 = vrot.slane %v2609_v13, 4  ;;  %v3394_v42 = vperm.slane %v2609_v13, %v3268_v31 }
 0x183   :  { %v557_v27 = vrot.slane %v556_v21, 1 }
 0x184   :  { %v2634_v48 = vrot.slane %v3394_v42, 4 }
 0x186   :  { %v2635_v55 = vsel %vm983_vm8, 0.0, %v2634_v48 }
 0x189   :  { %417 = vmax.xlane.f32.xlu0 %v416_v22  ;;  %2650 = vrot.lane.b32.xlu2 %v2597_v39, %s3120_s0  ;;  %v2615_v22 = vsel %vm983_vm8, 0.0, %v2614_v18  ;;  %v3390_v39 = vadd.f32 %v557_v27, %v556_v21 }
 0x18a   :  { %v2623_v33 = vperm.slane %v2615_v22, %v3268_v31 }
 0x18b   :  { %2879 = vrcp.f32 %v3390_v39  ;;  %vm593_vm15 = vweird.f32 %v3390_v39 }
 0x191   :  { %2698 = vrot.lane.b32.xlu2 %v3346_v46, %s3122_s25  ;;  %v2604_v46 = vrot.slane %v3370_v12, 4  ;;  %v3409_v52 = vpop.eup %2879 }
 0x192   :  { %v589_v60 = vmul.f32 %v3409_v52, %v3390_v39  ;;  %vm594_vm14 = vweird.f32 %v3409_v52 }
 0x193   :  { %vm595_vm0 = vmor %vm593_vm15, %vm594_vm14 }
 0x19d   :  { %2648 = vrot.lane.b32.xlu0 %v2559_v59, %s3120_s0  ;;  %v523_v59 = vrot.slane %v522_v51, 2 }
 0x19f   :  { %v524_v3 = vmax.f32 %v522_v51, %v523_v59 }
 0x1a1   :  { %420 = vmax.xlane.f32.xlu1 %v419_v62  ;;  %v525_v13 = vrot.slane %v524_v3, 1 }
 0x1a3   :  { %v526_v26 = vmax.f32 %v524_v3, %v525_v13 }
 0x1a5   :  { %2696 = vrot.lane.b32.xlu0 %v2553_v19, %s3122_s25  ;;  %v576_v19 = vmul.f32 %v2878_v5, %v575_v15 }
 0x1a7   :  { %v577_v24 = vadd.f32 %v2878_v5, %v576_v19 }
 0x1a9   :  { %v581_v34 = vsel %vm580_vm4, %v2878_v5, %v577_v24  ;;  %v590_v5 = vsub.f32 1.0, %v589_v60 }
 0x1aa   :  { %v586_v40 = vsel %vm583_vm5, %v585_v38, %v581_v34 }
 0x1ab   :  { %v3399_v43 = vmul.f32 %v3337_v35, %v586_v40  ;;  %v2605_v35 = vsel %vm983_vm8, 0.0, %v2604_v46  ;;  %v591_v17 = vmul.f32 %v3409_v52, %v590_v5  ;;  %v535_v46 = vsub.f32 %v3323_v20, %v526_v26 }
 0x1ac   :  { %v2613_v57 = vperm.slane %v2605_v35, %v3266_v29 }
 0x1ad   :  { %2682 = vrot.lane.b32.xlu0 %v2599_v8, %s3125_s28  ;;  %v3407_v49 = vperm.slane %v3399_v43, %v3266_v29  ;;  %v1898_v2 = vrot.slane %v3399_v43, 4  ;;  %v592_v27 = vadd.f32 %v3409_v52, %v591_v17 }
 0x1ae   :  { %v3424_v6 = vperm.slane %v2613_v57, %v3268_v31  ;;  %v2624_v8 = vrot.slane %v2613_v57, 4 }
 0x1af   :  { %v1908_v58 = vrot.slane %v3407_v49, 4  ;;  %v1899_v11 = vsel %vm983_vm8, 0.0, %v1898_v2  ;;  %v596_v48 = vsel %vm595_vm0, %v3409_v52, %v592_v27 }
 0x1b0   :  { %v2625_v18 = vsel %vm983_vm8, 0.0, %v2624_v8  ;;  %v1907_v21 = vperm.slane %v1899_v11, %v3266_v29 }
 0x1b1   :  { %v1909_v1 = vsel %vm983_vm8, 0.0, %v1908_v58  ;;  %v3441_v30 = vperm.slane %v2625_v18, %v3268_v31 }
 0x1b2   :  { %v1917_v9 = vperm.slane %v1909_v1, %v3268_v31  ;;  %v1918_v40 = vrot.slane %v1907_v21, 4  ;;  %v3463_v35 = vperm.slane %v1907_v21, %v3268_v31 }
 0x1b4   :  { %v1930_v19 = vrot.slane %v1917_v9, 4  ;;  %v1932_v52 = vrot.slane %v3463_v35, 4 }
 0x1b5   :  { %2730 = vrot.lane.b32.xlu0 %v3376_v23, %s3126_s13 }
 0x1b6   :  { %v1931_v38 = vsel %vm983_vm8, 0.0, %v1930_v19 }
 0x1ba   :  { %423 = vmax.xlane.f32.xlu2 %v3383_v25  ;;  %2666 = vrot.lane.b32.xlu1 %v2585_v0, %s3121_s1  ;;  %v2636_v0 = vrot.slane %v2623_v33, 4 }
 0x1bd   :  { %2668 = vrot.lane.b32.xlu0 %v2623_v33, %s3121_s1  ;;  %v599_v33 = vand.u32 2147483648, %v3390_v39 }
 0x1bf   :  { %v600_v51 = vor.u32 1.1754944e-38, %v599_v33 }
 0x1c2   :  { %2714 = vrot.lane.b32.xlu1 %v2601_v41, %s3123_s26  ;;  %v597_v41 = vand.u32 2147483647, %v3390_v39 }
 0x1c4   :  { %v3401_v45 = vpop.xlane.xlu2 %414  ;;  %vm598_vm1 = vcmp.eq.f32.partialorder %v597_v41, 8.507059e+37 }
 0x1c5   :  { %v601_v39 = vsel %vm598_vm1, %v600_v51, %v596_v48  ;;  %vm669_vm1 = vcmask 64512  }
 0x1c6   :  { %v602_v58 = vmul.f32 %v3361_v63, %v601_v39 }
 0x1c8   :  { %v3471_v59 = vperm.slane %v602_v58, %v3266_v29 }
 0x1c9   :  { %v2647_v53 = vpop.permute.xlu1 %2646  ;;  %v2663_v54 = vpop.permute.xlu0 %2662 }
 0x1ca   :  { %2652 = vrot.lane.b32.xlu1 %v2635_v55, %s3120_s0  ;;  %v2754_v61 = vsel %vm412_vm7, %v3278_v36, %v2647_v53  ;;  %v2637_v36 = vsel %vm983_vm8, 0.0, %v2636_v0  ;;  %v1919_v53 = vsel %vm983_vm8, 0.0, %v1918_v40 }
 0x1cb   :  { %v2758_v4 = vsel %vm1515_vm6, %v2754_v61, %v2663_v54  ;;  %v541_v54 = vmul.f32 1.442695, %v535_v46  ;;  %v3460_v55 = vperm.slane %v1919_v53, %v3268_v31  ;;  %v1933_v61 = vsel %vm983_vm8, 0.0, %v1932_v52 }
 0x1cc   :  { %v2679_v62 = vpop.permute.xlu2 %2678  ;;  %v2638_v52 = vrot.slane %v3424_v6, 4 }
 0x1cd   :  { %v2762_v10 = vsel %vm1520_vm9, %v2758_v4, %v2679_v62  ;;  %2881 = vpow2.f32 %v541_v54  ;;  %v3476_v62 = vperm.slane %v3471_v59, %v3268_v31 }
 0x1cf   :  { %v1966_v0 = vrot.slane %v3476_v62, 4 }
 0x1d1   :  { %v2695_v7 = vpop.permute.xlu1 %2694  ;;  %v2711_v15 = vpop.permute.xlu0 %2710  ;;  %v1967_v3 = vsel %vm983_vm8, 0.0, %v1966_v0 }
 0x1d2   :  { %2684 = vrot.lane.b32.xlu2 %v2637_v36, %s3125_s28  ;;  %2700 = vrot.lane.b32.xlu1 %v3424_v6, %s3122_s25  ;;  %v2766_v14 = vsel %vm1525_vm10, %v2762_v10, %v2695_v7 }
 0x1d3   :  { %v2770_v22 = vsel %vm1530_vm11, %v2766_v14, %v2711_v15  ;;  %v2882_v60 = vpop.eup %2881 }
 0x1d4   :  { %v2727_v24 = vpop.permute.xlu2 %2726  ;;  %v559_v57 = vsel %vm412_vm7, %v2882_v60, 0.0 }
 0x1d5   :  { %v2774_v34 = vsel %vm1535_vm12, %v2770_v22, %v2727_v24  ;;  %v560_v2 = vrot.slane %v559_v57, 4 }
 0x1d7   :  { %v561_v5 = vadd.f32 %v560_v2, %v559_v57 }
 0x1d9   :  { %v2743_v37 = vpop.permute.xlu1 %2742  ;;  %v562_v36 = vrot.slane %v561_v5, 2 }
 0x1da   :  { %v2778_v44 = vsel %vm1540_vm13, %v2774_v34, %v2743_v37  ;;  %2732 = vrot.lane.b32.xlu2 %v3441_v30, %s3126_s13  ;;  %2086 = vrot.lane.b32.xlu1 %v1931_v38, %s3125_s28  ;;  %v527_v37 = vrot.slane %v3383_v25, 4 }
 0x1db   :  { %2782 = vst [vmem:[%s4568_s12 + $0x2] sm:$0x1] %v2778_v44  ;;  %v563_v10 = vadd.f32 %v562_v36, %v561_v5  ;;  %v633_v5 = vld [vmem:[#allocation7] sm:$0xff] }
 0x1dc   :  { %v528_v40 = vmax.f32 %v3383_v25, %v527_v37  ;;  %691 = vmatpush.msra.mxu2 %v633_v5 }
 0x1dd   :  { %v564_v13 = vrot.slane %v563_v10, 1 }
 0x1de   :  { %v529_v41 = vrot.slane %v528_v40, 2 }
 0x1df   :  { %637 = vxpose.xlu0.b32.start.end [1/1] (short) (narrow) %v3399_v43, 16  ;;  %v1936_v43 = vrot.slane %v602_v58, 4  ;;  %v565_v15 = vadd.f32 %v564_v13, %v563_v10 }
 0x1e0   :  { %v530_v44 = vmax.f32 %v528_v40, %v529_v41 }
 0x1e1   :  { %v1937_v63 = vsel %vm983_vm8, 0.0, %v1936_v43  ;;  %2883 = vrcp.f32 %v565_v15  ;;  %v614_v24 = vand.u32 2147483648, %v565_v15  ;;  %vm608_vm3 = vweird.f32 %v565_v15 }
 0x1e2   :  { %2070 = vrot.lane.b32.xlu2 %v1917_v9, %s3121_s1  ;;  %2134 = vrot.lane.b32.xlu1 %v3460_v55, %s3126_s13  ;;  %v1945_v1 = vperm.slane %v1937_v63, %v3266_v29  ;;  %v612_v26 = vand.u32 2147483647, %v565_v15  ;;  %v531_v46 = vrot.slane %v530_v44, 1  ;;  %v3517_v63 = vperm.slane %v3407_v49, %v3268_v31 }
 0x1e3   :  { %v615_v33 = vor.u32 1.1754944e-38, %v614_v24  ;;  %v1946_v49 = vrot.slane %v3471_v59, 4 }
 0x1e4   :  { %v1956_v4 = vrot.slane %v1945_v1, 4  ;;  %v3487_v8 = vperm.slane %v1945_v1, %v3268_v31  ;;  %vm613_vm5 = vcmp.eq.f32.partialorder %v612_v26, 8.507059e+37  ;;  %v532_v48 = vmax.f32 %v530_v44, %v531_v46 }
 0x1e5   :  { %v1928_v0 = vrot.slane %v3517_v63, 4 }
 0x1e6   :  { %v1957_v7 = vsel %vm983_vm8, 0.0, %v1956_v4  ;;  %v536_v51 = vsub.f32 %v3370_v12, %v532_v48  ;;  %v1970_v44 = vrot.slane %v3487_v8, 4 }
 0x1e7   :  { %v3490_v9 = vperm.slane %v1957_v7, %v3268_v31  ;;  %v2884_v17 = vpop.eup %2883  ;;  %v1929_v6 = vsel %vm983_vm8, 0.0, %v1928_v0 }
 0x1e8   :  { %v604_v18 = vmul.f32 %v2884_v17, %v565_v15  ;;  %vm609_vm2 = vweird.f32 %v2884_v17  ;;  %v543_v53 = vmul.f32 1.442695, %v536_v51  ;;  %v1947_v15 = vsel %vm983_vm8, 0.0, %v1946_v49 }
 0x1e9   :  { %v1972_v11 = vrot.slane %v3490_v9, 4  ;;  %vm610_vm4 = vmor %vm608_vm3, %vm609_vm2 }
 0x1ea   :  { %2118 = vrot.lane.b32.xlu2 %v1933_v61, %s3123_s26  ;;  %v605_v19 = vsub.f32 1.0, %v604_v18  ;;  %2885 = vpow2.f32 %v543_v53  ;;  %v2639_v61 = vsel %vm983_vm8, 0.0, %v2638_v52  ;;  %v1955_v18 = vperm.slane %v1947_v15, %v3268_v31 }
 0x1eb   :  { %v1973_v14 = vsel %vm983_vm8, 0.0, %v1972_v11  ;;  %v3532_v11 = vpop.permute.xlu1 %2680 }
 0x1ec   :  { %v606_v21 = vmul.f32 %v2884_v17, %v605_v19  ;;  %4572 = vst [vmem:[#allocation24_spill] sm:$0xff] %v3532_v11  ;;  %v1968_v19 = vrot.slane %v1955_v18, 4 }
 0x1ee   :  { %v607_v22 = vadd.f32 %v2884_v17, %v606_v21 }
 0x1f0   :  { %v611_v27 = vsel %vm610_vm4, %v2884_v17, %v607_v22  ;;  %v3505_v54 = vpop.eup %2885 }
 0x1f1   :  { %v616_v34 = vsel %vm613_vm5, %v615_v33, %v611_v27 }
 0x1f2   :  { %2056 = vrot.lane.b32.xlu2 %v1967_v3, %s3120_s0  ;;  %v3498_v38 = vmul.f32 %v2882_v60, %v616_v34  ;;  %v3510_v60 = vpop.permute.xlu2 %2664 }
 0x1f3   :  { %v3543_v21 = vpop.permute.xlu1 %2728 }
 0x1f4   :  { %4573 = vst [vmem:[#allocation25_spill] sm:$0xff] %v3543_v21  ;;  %v1979_v27 = vperm.slane %v3498_v38, %v3266_v29  ;;  %v1974_v37 = vrot.slane %v3498_v38, 4 }
 0x1f6   :  { %v1984_v46 = vrot.slane %v1979_v27, 4  ;;  %v1975_v48 = vsel %vm983_vm8, 0.0, %v1974_v37 }
 0x1f8   :  { %v1985_v52 = vsel %vm983_vm8, 0.0, %v1984_v46 }
 0x1fa   :  { %2104 = vrot.lane.b32.xlu2 %v3487_v8, %s3122_s25  ;;  %v3521_v2 = vpop.permute.xlu2 %2712  ;;  %v1983_v8 = vperm.slane %v1975_v48, %v3266_v29 }
 0x1fb   :  { %4570 = vst [vmem:[#allocation22_spill] sm:$0xff] %v3521_v2 }
 0x1fc   :  { %v3503_v39 = vpop.xlane.xlu0 %417  ;;  %v1999_v5 = vperm.slane %v1983_v8, %v3268_v31 }
 0x202   :  { %2152 = vrot.lane.b32.xlu2 %v1973_v14, %s3124_s27  ;;  %v3530_v10 = vpop.permute.xlu2 %2650  ;;  %v1934_v14 = vrot.slane %v3460_v55, 4  ;;  %v1969_v55 = vsel %vm983_vm8, 0.0, %v1968_v19 }
 0x204   :  { %v1935_v17 = vsel %vm983_vm8, 0.0, %v1934_v14  ;;  %v1994_v14 = vrot.slane %v1983_v8, 4 }
 0x20a   :  { %v3541_v59 = vpop.permute.xlu2 %2698 }
 0x20f   :  { %v3512_v25 = vpop.permute.xlu0 %2648 }
 0x214   :  { %v3553_v34 = vpop.xlane.xlu1 %420 }
 0x217   :  { %699 = vxpose.xlu1.b32.start.end [1/1] (short) (narrow) %v602_v58, 16  ;;  %v566_v58 = vsel %vm412_vm7, %v3505_v54, 0.0  ;;  %v3524_v3 = vpop.permute.xlu0 %2696 }
 0x218   :  { %v567_v43 = vrot.slane %v566_v58, 4  ;;  %4571 = vst [vmem:[#allocation23_spill] sm:$0xff] %v3524_v3 }
 0x21a   :  { %v568_v57 = vadd.f32 %v567_v43, %v566_v58  ;;  %v3566_v43 = vperm.slane %v1979_v27, %v3268_v31  ;;  %v634_v27 = vld [vmem:[#allocation7 + $0x8] sm:$0xff] }
 0x21b   :  { %752 = vmatpush.msra.mxu3 %v634_v27 }
 0x21c   :  { %v569_v1 = vrot.slane %v568_v57, 2 }
 0x21e   :  { %v570_v4 = vadd.f32 %v569_v1, %v568_v57  ;;  %v1993_v1 = vperm.slane %v1985_v52, %v3268_v31 }
 0x21f   :  { %v3534_v13 = vpop.permute.xlu0 %2682 }
 0x220   :  { %v571_v7 = vrot.slane %v570_v4, 1  ;;  %v2006_v37 = vrot.slane %v1993_v1, 4 }
 0x222   :  { %v572_v36 = vadd.f32 %v571_v7, %v570_v4  ;;  %v2004_v4 = vrot.slane %v3566_v43, 4 }
 0x224   :  { %2887 = vrcp.f32 %v572_v36  ;;  %vm623_vm14 = vweird.f32 %v572_v36  ;;  %v629_v51 = vand.u32 2147483648, %v572_v36  ;;  %v627_v58 = vand.u32 2147483647, %v572_v36 }
 0x225   :  { %v2005_v49 = vsel %vm983_vm8, 0.0, %v2004_v4 }
 0x226   :  { %v630_v57 = vor.u32 1.1754944e-38, %v629_v51  ;;  %vm628_vm2 = vcmp.eq.f32.partialorder %v627_v58, 8.507059e+37 }
 0x227   :  { %v3545_v22 = vpop.permute.xlu0 %2730 }
 0x228   :  { %760 = vxpose.xlu2.b32.start.end [1/1] (short) (narrow) %v3498_v38, 16  ;;  %v1971_v38 = vsel %vm983_vm8, 0.0, %v1970_v44 }
 0x22d   :  { %v3551_v33 = vpop.xlane.xlu2 %423 }
 0x22f   :  { %v3557_v40 = vpop.permute.xlu0 %2668 }
 0x255   :  { %2716 = vrot.lane.b32.xlu0 %v2639_v61, %s3123_s26  ;;  %v3569_v61 = vpop.permute.xlu1 %2666 }
 0x25d   :  { %2054 = vrot.lane.b32.xlu0 %v1929_v6, %s3120_s0 }
 0x265   :  { %2102 = vrot.lane.b32.xlu0 %v3463_v35, %s3122_s25  ;;  %v2888_v35 = vpop.eup %2887 }
 0x266   :  { %v619_v24 = vmul.f32 %v2888_v35, %v572_v36  ;;  %vm624_vm15 = vweird.f32 %v2888_v35  ;;  %v2008_v36 = vrot.slane %v1999_v5, 4 }
 0x267   :  { %vm625_vm0 = vmor %vm623_vm14, %vm624_vm15 }
 0x268   :  { %v620_v26 = vsub.f32 1.0, %v619_v24  ;;  %v2009_v19 = vsel %vm983_vm8, 0.0, %v2008_v36  ;;  %v1995_v24 = vsel %vm983_vm8, 0.0, %v1994_v14 }
 0x26a   :  { %v621_v41 = vmul.f32 %v2888_v35, %v620_v26  ;;  %v2003_v26 = vperm.slane %v1995_v24, %v3268_v31 }
 0x26c   :  { %v622_v53 = vadd.f32 %v2888_v35, %v621_v41  ;;  %v2010_v41 = vrot.slane %v2003_v26, 4 }
 0x26d   :  { %2150 = vrot.lane.b32.xlu0 %v1935_v17, %s3124_s27  ;;  %v3582_v17 = vpop.permute.xlu1 %2714 }
 0x26e   :  { %v626_v6 = vsel %vm625_vm0, %v2888_v35, %v622_v53  ;;  %v2007_v53 = vsel %vm983_vm8, 0.0, %v2006_v37  ;;  %v2011_v58 = vsel %vm983_vm8, 0.0, %v2010_v41  ;;  %v427_v37 = vsub.f32 %v3323_v20, %v3553_v34 }
 0x26f   :  { %v631_v7 = vsel %vm628_vm2, %v630_v57, %v626_v6  ;;  %v428_v20 = vsub.f32 %v3370_v12, %v3551_v33 }
 0x270   :  { %v632_v15 = vmul.f32 %v3505_v54, %v631_v7 }
 0x272   :  { %v2012_v48 = vrot.slane %v632_v15, 4 }
 0x274   :  { %v2013_v52 = vsel %vm983_vm8, 0.0, %v2012_v48 }
 0x275   :  { %2088 = vrot.lane.b32.xlu0 %v1969_v55, %s3125_s28  ;;  %v3591_v55 = vperm.slane %v632_v15, %v3266_v29  ;;  %v3596_v44 = vpop.permute.xlu1 %2652  ;;  %v2021_v57 = vperm.slane %v2013_v52, %v3266_v29 }
 0x277   :  { %v2022_v54 = vrot.slane %v3591_v55, 4  ;;  %v2032_v4 = vrot.slane %v2021_v57, 4 }
 0x279   :  { %2072 = vrot.lane.b32.xlu1 %v1955_v18, %s3121_s1  ;;  %v2023_v46 = vsel %vm983_vm8, 0.0, %v2022_v54 }
 0x27d   :  { %2136 = vrot.lane.b32.xlu0 %v3490_v9, %s3126_s13  ;;  %v3572_v9 = vpop.permute.xlu2 %2684 }
 0x281   :  { %2120 = vrot.lane.b32.xlu1 %v1971_v38, %s3123_s26  ;;  %v2031_v38 = vperm.slane %v2023_v46, %v3268_v31  ;;  %v433_v46 = vmul.f32 1.442695, %v427_v37 }
 0x283   :  { %v653_v0 = vpop.trf.xlu0  ;;  %v2044_v8 = vrot.slane %v2031_v38, 4  ;;  %2889 = vpow2.f32 %v433_v46 }
 0x284   :  { %2830 = vmatmul.msk.f32.vlgmr.msra.gmra.mxu2 %vm669_vm1, %v653_v0  ;;  %v3606_v0 = vpop.permute.xlu1 %2700 }
 0x285   :  { %2074 = vrot.lane.b32.xlu0 %v1993_v1, %s3121_s1  ;;  %v3584_v35 = vpop.permute.xlu2 %2732  ;;  %4575 = vst [vmem:[#allocation27_spill] sm:$0xff] %v3606_v0  ;;  %v2045_v6 = vsel %vm983_vm8, 0.0, %v2044_v8 }
 0x286   :  { %4574 = vst [vmem:[#allocation26_spill] sm:$0xff] %v3584_v35 }
 0x289   :  { %2058 = vrot.lane.b32.xlu1 %v2005_v49, %s3120_s0  ;;  %v3616_v49 = vperm.slane %v2021_v57, %v3268_v31  ;;  %v3633_v52 = vpop.eup %2889 }
 0x28b   :  { %v654_v18 = vpop.trf.xlu0 }
 0x28c   :  { %2831 = vmatmul.msk.f32.gmra.mxu2 %vm669_vm1, %v654_v18  ;;  %v2087_v36 = vpop.permute.xlu1 %2086  ;;  %v2046_v18 = vrot.slane %v3616_v49, 4 }
 0x28d   :  { %2122 = vrot.lane.b32.xlu0 %v2009_v19, %s3123_s26  ;;  %v2071_v51 = vpop.permute.xlu2 %2070 }
 0x28e   :  { %v2047_v19 = vsel %vm983_vm8, 0.0, %v2046_v18 }
 0x291   :  { %2106 = vrot.lane.b32.xlu1 %v1999_v5, %s3122_s25  ;;  %v2033_v5 = vsel %vm983_vm8, 0.0, %v2032_v4 }
 0x292   :  { %v3613_v7 = vperm.slane %v2033_v5, %v3268_v31 }
 0x294   :  { %v2135_v24 = vpop.permute.xlu1 %2134 }
 0x295   :  { %v2119_v1 = vpop.permute.xlu2 %2118 }
 0x299   :  { %2090 = vrot.lane.b32.xlu2 %v2007_v53, %s3125_s28  ;;  %2154 = vrot.lane.b32.xlu1 %v2011_v58, %s3124_s27  ;;  %v425_v58 = vsub.f32 %v3270_v32, %v3401_v45  ;;  %v443_v32 = vsel %vm412_vm7, %v3633_v52, 0.0  ;;  %v435_v45 = vmul.f32 1.442695, %v428_v20 }
 0x29d   :  { %v2057_v14 = vpop.permute.xlu2 %2056 }
 0x2a1   :  { %2138 = vrot.lane.b32.xlu2 %v2003_v26, %s3126_s13  ;;  %2092 = vrot.lane.b32.xlu1 %v2045_v6, %s3125_s28 }
 0x2a5   :  { %v2105_v26 = vpop.permute.xlu2 %2104 }
 0x2a9   :  { %2076 = vrot.lane.b32.xlu2 %v2031_v38, %s3121_s1  ;;  %2140 = vrot.lane.b32.xlu1 %v3613_v7, %s3126_s13  ;;  %v429_v38 = vmul.f32 1.442695, %v425_v58 }
 0x2ab   :  { %2891 = vpow2.f32 %v429_v38 }
 0x2ac   :  { %2893 = vpow2.f32 %v435_v45 }
 0x2ad   :  { %v2153_v27 = vpop.permute.xlu2 %2152 }
 0x2af   :  { %821 = vxpose.xlu0.b32.start.end [1/1] (short) (narrow) %v632_v15, 16  ;;  %v635_v15 = vld [vmem:[#allocation7 + $0x10] sm:$0xff] }
 0x2b0   :  { %813 = vmatpush.msrb.mxu2 %v635_v15 }
 0x2b1   :  { %2124 = vrot.lane.b32.xlu2 %v2047_v19, %s3123_s26  ;;  %v3643_v4 = vpop.eup %2891 }
 0x2b2   :  { %v437_v33 = vsel %vm412_vm7, %v3643_v4, 0.0  ;;  %v3650_v19 = vpop.eup %2893 }
 0x2bb   :  { %v715_v54 = vpop.trf.xlu1 }
 0x2bc   :  { %2832 = vmatmul.msk.f32.vlgmr.msra.gmra.mxu3 %vm669_vm1, %v715_v54 }
 0x2c1   :  { %v776_v48 = vpop.trf.xlu2 }
 0x2c2   :  { %2834 = vmatmul.msk.f32.vlgmr.msrb.gmra.mxu2 %vm669_vm1, %v776_v48 }
 0x2c3   :  { %v716_v41 = vpop.trf.xlu1 }
 0x2c4   :  { %2833 = vmatmul.msk.f32.gmra.mxu3 %vm669_vm1, %v716_v41 }
 0x2c7   :  { %v3628_v53 = vpop.permute.xlu0 %2716 }
 0x2c8   :  { %4576 = vst [vmem:[#allocation28_spill] sm:$0xff] %v3628_v53 }
 0x2c9   :  { %v777_v34 = vpop.trf.xlu2 }
 0x2ca   :  { %2835 = vmatmul.msk.f32.gmra.mxu2 %vm669_vm1, %v777_v34 }
 0x2cf   :  { %v2055_v8 = vpop.permute.xlu0 %2054 }
 0x2d0   :  { %v2162_v57 = vsel %vm412_vm7, %v3517_v63, %v2055_v8 }
 0x2d1   :  { %v2166_v6 = vsel %vm1515_vm6, %v2162_v57, %v2071_v51 }
 0x2d2   :  { %v2170_v18 = vsel %vm1520_vm9, %v2166_v6, %v2087_v36  ;;  %v446_v36 = vsel %vm412_vm7, %v3650_v19, 0.0 }
 0x2d3   :  { %444 = vadd.xlane.f32.xlu1 %v443_v32 }
 0x2d7   :  { %v2103_v5 = vpop.permute.xlu0 %2102 }
 0x2d8   :  { %v2174_v12 = vsel %vm1525_vm10, %v2170_v18, %v2103_v5 }
 0x2d9   :  { %v2178_v63 = vsel %vm1530_vm11, %v2174_v12, %v2119_v1  ;;  %v2163_v1 = vsel %vm412_vm7, %v3476_v62, %v2057_v14 }
 0x2da   :  { %438 = vadd.xlane.f32.xlu2 %v437_v33  ;;  %v2182_v37 = vsel %vm1535_vm12, %v2178_v63, %v2135_v24 }
 0x2df   :  { %v2151_v54 = vpop.permute.xlu0 %2150 }
 0x2e0   :  { %v2186_v51 = vsel %vm1540_vm13, %v2182_v37, %v2151_v54 }
 0x2e1   :  { %2190 = vst [vmem:[%s4568_s12] sm:$0x1] %v2186_v51 }
 0x2e2   :  { %447 = vadd.xlane.f32.xlu2 %v446_v36 }
 0x2e7   :  { %v2089_v41 = vpop.permute.xlu0 %2088 }
 0x2eb   :  { %v2073_v46 = vpop.permute.xlu1 %2072 }
 0x2ec   :  { %v2167_v48 = vsel %vm1515_vm6, %v2163_v1, %v2073_v46 }
 0x2ed   :  { %v2171_v15 = vsel %vm1520_vm9, %v2167_v48, %v2089_v41 }
 0x2ee   :  { %v2175_v58 = vsel %vm1525_vm10, %v2171_v15, %v2105_v26 }
 0x2ef   :  { %v2137_v24 = vpop.permute.xlu0 %2136 }
 0x2f3   :  { %v2121_v38 = vpop.permute.xlu1 %2120  ;;  %v2091_v32 = vpop.permute.xlu2 %2090 }
 0x2f4   :  { %v2179_v8 = vsel %vm1530_vm11, %v2175_v58, %v2121_v38 }
 0x2f5   :  { %v2183_v20 = vsel %vm1535_vm12, %v2179_v8, %v2137_v24 }
 0x2f6   :  { %v2187_v34 = vsel %vm1540_vm13, %v2183_v20, %v2153_v27 }
 0x2f7   :  { %2191 = vst [vmem:[%s4568_s12 + $0x4] sm:$0x1] %v2187_v34  ;;  %v2075_v62 = vpop.permute.xlu0 %2074 }
 0x2fb   :  { %v2059_v57 = vpop.permute.xlu1 %2058  ;;  %v2139_v54 = vpop.permute.xlu2 %2138 }
 0x2fc   :  { %v2164_v14 = vsel %vm412_vm7, %v3566_v43, %v2059_v57 }
 0x2fd   :  { %v2168_v45 = vsel %vm1515_vm6, %v2164_v14, %v2075_v62 }
 0x2fe   :  { %v2172_v6 = vsel %vm1520_vm9, %v2168_v45, %v2091_v32 }
 0x2ff   :  { %v2123_v18 = vpop.permute.xlu0 %2122 }
 0x303   :  { %v2107_v26 = vpop.permute.xlu1 %2106 }
 0x304   :  { %v2176_v5 = vsel %vm1525_vm10, %v2172_v6, %v2107_v26 }
 0x305   :  { %v2180_v27 = vsel %vm1530_vm11, %v2176_v5, %v2123_v18 }
 0x306   :  { %v2184_v36 = vsel %vm1535_vm12, %v2180_v27, %v2139_v54  ;;  %v3711_v27 = vperm.slane %v3591_v55, %v3268_v31 }
 0x307   :  { %v693_v12 = vpop.f32.mrf.mxu2 }
 0x308   :  { %v982_v33 = vrot.slane %v693_v12, 4  ;;  %v988_v63 = vperm.slane %v693_v12, %v3266_v29 }
 0x30a   :  { %v984_v37 = vsel %vm983_vm8, 0.0, %v982_v33  ;;  %v3679_v43 = vperm.slane %v988_v63, %v3268_v31  ;;  %v993_v46 = vrot.slane %v988_v63, 4 }
 0x30b   :  { %v992_v51 = vperm.slane %v984_v37, %v3266_v29  ;;  %v2155_v41 = vpop.permute.xlu1 %2154  ;;  %v2042_v37 = vrot.slane %v3711_v27, 4 }
 0x30c   :  { %v2188_v1 = vsel %vm1540_vm13, %v2184_v36, %v2155_v41  ;;  %v1013_v48 = vrot.slane %v3679_v43, 4  ;;  %v994_v20 = vsel %vm983_vm8, 0.0, %v993_v46 }
 0x30d   :  { %2192 = vst [vmem:[%s4568_s12 + $0x8] sm:$0x1] %v2188_v1  ;;  %v1008_v15 = vperm.slane %v992_v51, %v3268_v31  ;;  %v3699_v14 = vperm.slane %v994_v20, %v3268_v31  ;;  %v1003_v45 = vrot.slane %v992_v51, 4  ;;  %v2043_v1 = vsel %vm983_vm8, 0.0, %v2042_v37 }
 0x30e   :  { %v1014_v24 = vsel %vm983_vm8, 0.0, %v1013_v48 }
 0x30f   :  { %v696_v58 = vpop.f32.mrf.mxu2  ;;  %v1017_v38 = vrot.slane %v1008_v15, 4  ;;  %1291 = vrot.lane.b32.xlu2 %v1014_v24, %s3120_s0  ;;  %v1004_v5 = vsel %vm983_vm8, 0.0, %v1003_v45 }
 0x310   :  { %v1026_v8 = vperm.slane %v696_v58, %v3266_v29  ;;  %v1021_v62 = vrot.slane %v696_v58, 4  ;;  %v3714_v33 = vperm.slane %v1004_v5, %v3268_v31 }
 0x311   :  { %v1018_v34 = vsel %vm983_vm8, 0.0, %v1017_v38 }
 0x312   :  { %v3695_v57 = vperm.slane %v1026_v8, %v3268_v31  ;;  %1355 = vrot.lane.b32.xlu1 %v1018_v34, %s3123_s26  ;;  %v1022_v26 = vsel %vm983_vm8, 0.0, %v1021_v62  ;;  %v1031_v63 = vrot.slane %v1026_v8, 4  ;;  %v1019_v51 = vrot.slane %v3714_v33, 4  ;;  %v3747_v62 = vpop.permute.xlu2 %2076 }
 0x313   :  { %v1030_v18 = vperm.slane %v1022_v26, %v3266_v29  ;;  %v2048_v8 = vrot.slane %v3613_v7, 4  ;;  %v3742_v20 = vpop.permute.xlu1 %2092 }
 0x314   :  { %v1051_v32 = vrot.slane %v3695_v57, 4  ;;  %v1032_v41 = vsel %vm983_vm8, 0.0, %v1031_v63  ;;  %v1020_v48 = vsel %vm983_vm8, 0.0, %v1019_v51  ;;  %v883_v51 = vld [vmem:[#allocation8 + $0x8] sm:$0xff] }
 0x315   :  { %v1041_v12 = vrot.slane %v1030_v18, 4  ;;  %v3717_v54 = vperm.slane %v1030_v18, %v3268_v31  ;;  %v2049_v34 = vsel %vm983_vm8, 0.0, %v2048_v8  ;;  %907 = vmatpush.msra.mxu2 %v883_v51 }
 0x316   :  { %v1052_v6 = vsel %vm983_vm8, 0.0, %v1051_v32  ;;  %v887_v32 = vld [vmem:[#allocation8 + $0x28] sm:$0xff] }
 0x317   :  { %1307 = vrot.lane.b32.xlu2 %v3699_v14, %s3121_s1  ;;  %v1042_v36 = vsel %vm983_vm8, 0.0, %v1041_v12  ;;  %953 = vmatpush.msrb.mxu0 %v887_v32  ;;  %v636_v12 = vld [vmem:[#allocation7 + $0x18] sm:$0xff] }
 0x318   :  { %v1050_v55 = vperm.slane %v1042_v36, %v3268_v31  ;;  %874 = vmatpush.msrb.mxu3 %v636_v12 }
 0x31a   :  { %1403 = vrot.lane.b32.xlu1 %v1052_v6, %s3120_s0  ;;  %v1057_v46 = vrot.slane %v1050_v55, 4  ;;  %v3758_v36 = vpop.permute.xlu2 %2124 }
 0x31b   :  { %v3749_v45 = vpop.permute.xlu1 %2140 }
 0x31c   :  { %v1058_v24 = vsel %vm983_vm8, 0.0, %v1057_v46  ;;  %v882_v46 = vld [vmem:[#allocation8] sm:$0xff] }
 0x31d   :  { %908 = vmatpush.msra.mxu2 %v882_v46 }
 0x31f   :  { %1339 = vrot.lane.b32.xlu2 %v1008_v15, %s3122_s25  ;;  %v3730_v15 = vperm.slane %v1032_v41, %v3268_v31 }
 0x321   :  { %v1053_v58 = vrot.slane %v3730_v15, 4 }
 0x322   :  { %1451 = vrot.lane.b32.xlu1 %v3717_v54, %s3122_s25 }
 0x323   :  { %v1054_v38 = vsel %vm983_vm8, 0.0, %v1053_v58 }
 0x325   :  { %2060 = vrot.lane.b32.xlu0 %v2043_v1, %s3120_s0  ;;  %v889_v1 = vld [vmem:[#allocation8 + $0x38] sm:$0xff] }
 0x326   :  { %976 = vmatpush.msrb.mxu2 %v889_v1 }
 0x327   :  { %1387 = vrot.lane.b32.xlu2 %v1020_v48, %s3124_s27 }
 0x32a   :  { %1499 = vrot.lane.b32.xlu1 %v1058_v24, %s3124_s27  ;;  %v888_v24 = vld [vmem:[#allocation8 + $0x30] sm:$0xff] }
 0x32b   :  { %977 = vmatpush.msrb.mxu2 %v888_v24 }
 0x32d   :  { %2108 = vrot.lane.b32.xlu0 %v3616_v49, %s3122_s25  ;;  %v886_v49 = vld [vmem:[#allocation8 + $0x20] sm:$0xff] }
 0x32e   :  { %954 = vmatpush.msrb.mxu0 %v886_v49 }
 0x32f   :  { %1435 = vrot.lane.b32.xlu2 %v1054_v38, %s3125_s28 }
 0x335   :  { %2156 = vrot.lane.b32.xlu0 %v2049_v34, %s3124_s27 }
 0x337   :  { %1483 = vrot.lane.b32.xlu2 %v1050_v55, %s3126_s13 }
 0x33f   :  { %v754_v26 = vpop.f32.mrf.mxu3 }
 0x340   :  { %v1059_v6 = vrot.slane %v754_v26, 4  ;;  %v3752_v5 = vperm.slane %v754_v26, %v3266_v29 }
 0x342   :  { %v1060_v7 = vsel %vm983_vm8, 0.0, %v1059_v6  ;;  %v1069_v18 = vrot.slane %v3752_v5, 4  ;;  %v426_v6 = vsub.f32 %v3293_v56, %v3503_v39 }
 0x343   :  { %v1068_v63 = vperm.slane %v1060_v7, %v3266_v29 }
 0x344   :  { %v1070_v37 = vsel %vm983_vm8, 0.0, %v1069_v18  ;;  %v431_v46 = vmul.f32 1.442695, %v426_v6 }
 0x345   :  { %v1078_v41 = vperm.slane %v1070_v37, %v3268_v31  ;;  %v1079_v48 = vrot.slane %v1068_v63, 4  ;;  %v3765_v34 = vperm.slane %v1068_v63, %v3268_v31 }
 0x346   :  { %v445_v55 = vpop.xlane.xlu1 %444 }
 0x347   :  { %2895 = vrcp.f32 %v445_v55  ;;  %1309 = vrot.lane.b32.xlu1 %v1078_v41, %s3121_s1  ;;  %v1091_v58 = vrot.slane %v1078_v41, 4  ;;  %v757_v38 = vpop.f32.mrf.mxu3  ;;  %v1080_v26 = vsel %vm983_vm8, 0.0, %v1079_v48  ;;  %v490_v24 = vand.u32 2147483648, %v445_v55 }
 0x348   :  { %v3768_v32 = vperm.slane %v757_v38, %v3266_v29  ;;  %v1097_v18 = vrot.slane %v757_v38, 4  ;;  %v1088_v37 = vperm.slane %v1080_v26, %v3268_v31  ;;  %v488_v56 = vand.u32 2147483647, %v445_v55 }
 0x349   :  { %v1092_v8 = vsel %vm983_vm8, 0.0, %v1091_v58  ;;  %vm484_vm4 = vweird.f32 %v445_v55 }
 0x34a   :  { %1325 = vrot.lane.b32.xlu2 %v1092_v8, %s3125_s28  ;;  %v1107_v63 = vrot.slane %v3768_v32, 4  ;;  %v1095_v41 = vrot.slane %v1088_v37, 4  ;;  %v1098_v1 = vsel %vm983_vm8, 0.0, %v1097_v18  ;;  %vm489_vm14 = vcmp.eq.f32.partialorder %v488_v56, 8.507059e+37 }
 0x34b   :  { %v1106_v26 = vperm.slane %v1098_v1, %v3266_v29 }
 0x34c   :  { %v1108_v39 = vsel %vm983_vm8, 0.0, %v1107_v63  ;;  %v1096_v47 = vsel %vm983_vm8, 0.0, %v1095_v41 }
 0x34d   :  { %v2896_v49 = vpop.eup %2895  ;;  %v439_v7 = vpop.xlane.xlu2 %438  ;;  %v3786_v41 = vperm.slane %v1106_v26, %v3268_v31 }
 0x34e   :  { %v480_v12 = vmul.f32 %v2896_v49, %v445_v55  ;;  %2897 = vrcp.f32 %v439_v7  ;;  %vm485_vm3 = vweird.f32 %v2896_v49  ;;  %v458_v55 = vand.u32 2147483647, %v439_v7 }
 0x34f   :  { %1341 = vrot.lane.b32.xlu1 %v3765_v34, %s3122_s25  ;;  %2899 = vpow2.f32 %v431_v46  ;;  %vm486_vm5 = vmor %vm484_vm4, %vm485_vm3  ;;  %vm454_vm0 = vweird.f32 %v439_v7 }
 0x350   :  { %v481_v51 = vsub.f32 1.0, %v480_v12  ;;  %v491_v12 = vor.u32 1.1754944e-38, %v490_v24  ;;  %vm459_vm3 = vcmp.eq.f32.partialorder %v458_v55, 8.507059e+37 }
 0x352   :  { %v482_v48 = vmul.f32 %v2896_v49, %v481_v51  ;;  %1373 = vrot.lane.b32.xlu2 %v1088_v37, %s3126_s13  ;;  %v1116_v37 = vperm.slane %v1108_v39, %v3268_v31 }
 0x353   :  { %v837_v58 = vpop.trf.xlu0 }
 0x354   :  { %v2898_v38 = vpop.eup %2897  ;;  %v483_v8 = vadd.f32 %v2896_v49, %v482_v48  ;;  %2836 = vmatmul.msk.f32.vlgmr.msrb.gmra.mxu3 %vm669_vm1, %v837_v58  ;;  %v460_v48 = vand.u32 2147483648, %v439_v7  ;;  %v1129_v21 = vrot.slane %v1116_v37, 4 }
 0x355   :  { %v450_v6 = vmul.f32 %v2898_v38, %v439_v7  ;;  %v448_v18 = vpop.xlane.xlu2 %447  ;;  %vm455_vm15 = vweird.f32 %v2898_v38  ;;  %v3791_v24 = vpop.eup %2899 }
 0x356   :  { %2901 = vrcp.f32 %v448_v18  ;;  %v487_v51 = vsel %vm486_vm5, %v2896_v49, %v483_v8  ;;  %vm456_vm2 = vmor %vm454_vm0, %vm455_vm15  ;;  %v461_v56 = vor.u32 1.1754944e-38, %v460_v48  ;;  %v1117_v8 = vrot.slane %v1106_v26, 4 }
 0x357   :  { %v451_v63 = vsub.f32 1.0, %v450_v6  ;;  %1389 = vrot.lane.b32.xlu1 %v1096_v47, %s3124_s27  ;;  %v492_v1 = vsel %vm489_vm14, %v491_v12, %v487_v51  ;;  %v1130_v6 = vsel %vm983_vm8, 0.0, %v1129_v21  ;;  %v1131_v12 = vrot.slane %v3786_v41, 4 }
 0x358   :  { %v3789_v58 = vmul.f32 %v3633_v52, %v492_v1  ;;  %v505_v26 = vand.u32 2147483648, %v448_v18  ;;  %v1118_v1 = vsel %vm983_vm8, 0.0, %v1117_v8  ;;  %vm499_vm4 = vweird.f32 %v448_v18 }
 0x359   :  { %v452_v46 = vmul.f32 %v2898_v38, %v451_v63  ;;  %v1132_v21 = vsel %vm983_vm8, 0.0, %v1131_v12 }
 0x35a   :  { %1421 = vrot.lane.b32.xlu2 %v1116_v37, %s3121_s1  ;;  %2840 = vmatmul.msk.f32.vlgmr.msrb.gmra.mxu0 %vm412_vm7, %v3789_v58  ;;  %v440_v37 = vsel %vm412_vm7, %v3791_v24, 0.0 }
 0x35b   :  { %v453_v39 = vadd.f32 %v2898_v38, %v452_v46  ;;  %v838_v47 = vpop.trf.xlu0 }
 0x35c   :  { %v2902_v49 = vpop.eup %2901  ;;  %2837 = vmatmul.msk.f32.gmra.mxu3 %vm669_vm1, %v838_v47  ;;  %v3809_v47 = vperm.slane %v1118_v1, %v3268_v31 }
 0x35d   :  { %v457_v52 = vsel %vm456_vm2, %v2898_v38, %v453_v39  ;;  %v495_v63 = vmul.f32 %v2902_v49, %v448_v18  ;;  %vm500_vm1 = vweird.f32 %v2902_v49  ;;  %v503_v38 = vand.u32 2147483647, %v448_v18 }
 0x35e   :  { %v462_v7 = vsel %vm459_vm3, %v461_v56, %v457_v52  ;;  %vm501_vm5 = vmor %vm499_vm4, %vm500_vm1  ;;  %v506_v56 = vor.u32 1.1754944e-38, %v505_v26  ;;  %vm1585_vm1 = vcmask 1040384  }
 0x35f   :  { %v496_v51 = vsub.f32 1.0, %v495_v63  ;;  %441 = vadd.xlane.f32.xlu0 %v440_v37  ;;  %1437 = vrot.lane.b32.xlu1 %v1130_v6, %s3125_s28  ;;  %v463_v48 = vmul.f32 %v3643_v4, %v462_v7  ;;  %vm504_vm14 = vcmp.eq.f32.partialorder %v503_v38, 8.507059e+37  ;;  %v815_v6 = vpop.f32.mrf.mxu2 }
 0x360   :  { %v1140_v37 = vperm.slane %v815_v6, %v3266_v29 }
 0x361   :  { %v497_v46 = vmul.f32 %v2902_v49, %v496_v51  ;;  %2838 = vmatmul.msk.f32.vlgmr.msra.gmra.mxu2 %vm412_vm7, %v463_v48  ;;  %v2199_v55 = vperm.slane %v463_v48, %v3266_v29  ;;  %v2194_v7 = vrot.slane %v463_v48, 4 }
 0x362   :  { %1469 = vrot.lane.b32.xlu2 %v1132_v21, %s3123_s26  ;;  %v3828_v48 = vperm.slane %v1140_v37, %v3268_v31  ;;  %v1015_v21 = vrot.slane %v3699_v14, 4  ;;  %v1145_v38 = vrot.slane %v1140_v37, 4 }
 0x363   :  { %v498_v39 = vadd.f32 %v2902_v49, %v497_v46  ;;  %v3812_v4 = vperm.slane %v2199_v55, %v3268_v31  ;;  %v2204_v63 = vrot.slane %v2199_v55, 4  ;;  %v2195_v26 = vsel %vm983_vm8, 0.0, %v2194_v7 }
 0x364   :  { %v2203_v46 = vperm.slane %v2195_v26, %v3266_v29  ;;  %v1016_v55 = vsel %vm983_vm8, 0.0, %v1015_v21 }
 0x365   :  { %v502_v8 = vsel %vm501_vm5, %v2902_v49, %v498_v39  ;;  %v2224_v52 = vrot.slane %v3812_v4, 4  ;;  %v2205_v51 = vsel %vm983_vm8, 0.0, %v2204_v63  ;;  %v1165_v39 = vrot.slane %v3828_v48, 4 }
 0x366   :  { %v507_v12 = vsel %vm504_vm14, %v506_v56, %v502_v8  ;;  %v3832_v1 = vperm.slane %v2205_v51, %v3268_v31  ;;  %v2219_v8 = vperm.slane %v2203_v46, %v3268_v31  ;;  %v2214_v37 = vrot.slane %v2203_v46, 4 }
 0x367   :  { %1485 = vrot.lane.b32.xlu1 %v3809_v47, %s3126_s13  ;;  %v3818_v18 = vmul.f32 %v3650_v19, %v507_v12  ;;  %v2225_v49 = vsel %vm983_vm8, 0.0, %v2224_v52  ;;  %v1135_v19 = vrot.slane %v815_v6, 4  ;;  %v1166_v6 = vsel %vm983_vm8, 0.0, %v1165_v39 }
 0x368   :  { %v1146_v12 = vsel %vm983_vm8, 0.0, %v1145_v38  ;;  %v2228_v7 = vrot.slane %v2219_v8, 4  ;;  %v2215_v26 = vsel %vm983_vm8, 0.0, %v2214_v37  ;;  %v818_v38 = vpop.f32.mrf.mxu2 }
 0x369   :  { %2841 = vmatmul.msk.f32.vlgmr.msrb.gmra.mxu2 %vm412_vm7, %v3818_v18  ;;  %v1136_v56 = vsel %vm983_vm8, 0.0, %v1135_v19  ;;  %v1154_v52 = vperm.slane %v1146_v12, %v3268_v31  ;;  %v1178_v39 = vperm.slane %v818_v38, %v3266_v29 }
 0x36a   :  { %2350 = vrot.lane.b32.xlu2 %v2225_v49, %s3120_s0  ;;  %v1144_v14 = vperm.slane %v1136_v56, %v3266_v29  ;;  %v2229_v51 = vsel %vm983_vm8, 0.0, %v2228_v7 }
 0x36b   :  { %v1167_v19 = vrot.slane %v1154_v52, 4  ;;  %v3875_v12 = vperm.slane %v1178_v39, %v3268_v31  ;;  %v1183_v7 = vrot.slane %v1178_v39, 4 }
 0x36c   :  { %v3849_v63 = vperm.slane %v1144_v14, %v3268_v31 }
 0x36d   :  { %v1168_v46 = vsel %vm983_vm8, 0.0, %v1167_v19  ;;  %v1093_v19 = vrot.slane %v3765_v34, 4 }
 0x36e   :  { %v1169_v49 = vrot.slane %v3849_v63, 4 }
 0x36f   :  { %2366 = vrot.lane.b32.xlu1 %v3832_v1, %s3121_s1  ;;  %v1094_v39 = vsel %vm983_vm8, 0.0, %v1093_v19 }
 0x370   :  { %v1170_v21 = vsel %vm983_vm8, 0.0, %v1169_v49 }
 0x372   :  { %2398 = vrot.lane.b32.xlu2 %v2219_v8, %s3122_s25  ;;  %v1055_v8 = vrot.slane %v3717_v54, 4 }
 0x373   :  { %1323 = vrot.lane.b32.xlu0 %v1016_v55, %s3125_s28  ;;  %v3860_v55 = vperm.slane %v2215_v26, %v3268_v31  ;;  %v1184_v26 = vsel %vm983_vm8, 0.0, %v1183_v7 }
 0x375   :  { %v2230_v56 = vrot.slane %v3860_v55, 4 }
 0x377   :  { %1295 = vrot.lane.b32.xlu1 %v1166_v6, %s3120_s0  ;;  %v3872_v6 = vperm.slane %v3752_v5, %v3268_v31  ;;  %v1203_v5 = vrot.slane %v3875_v12, 4 }
 0x379   :  { %v1089_v37 = vrot.slane %v3872_v6, 4  ;;  %v1204_v49 = vsel %vm983_vm8, 0.0, %v1203_v5 }
 0x37a   :  { %1311 = vrot.lane.b32.xlu2 %v1154_v52, %s3121_s1  ;;  %v1056_v52 = vsel %vm983_vm8, 0.0, %v1055_v8  ;;  %v3907_v8 = vpop.permute.xlu2 %1291 }
 0x37b   :  { %1371 = vrot.lane.b32.xlu0 %v3714_v33, %s3126_s13  ;;  %v1155_v33 = vrot.slane %v1144_v14, 4  ;;  %v2231_v14 = vsel %vm983_vm8, 0.0, %v2230_v56  ;;  %v1511_v0 = vsel %vm412_vm7, %v3679_v43, %v3907_v8 }
 0x37f   :  { %2414 = vrot.lane.b32.xlu1 %v2229_v51, %s3123_s26  ;;  %v1090_v51 = vsel %vm983_vm8, 0.0, %v1089_v37 }
 0x382   :  { %1359 = vrot.lane.b32.xlu2 %v1170_v21, %s3123_s26  ;;  %v3895_v21 = vperm.slane %v1184_v26, %v3268_v31  ;;  %v3920_v5 = vpop.permute.xlu2 %1307  ;;  %v1173_v26 = vrot.slane %v818_v38, 4 }
 0x383   :  { %1419 = vrot.lane.b32.xlu0 %v3730_v15, %s3121_s1  ;;  %v1156_v15 = vsel %vm983_vm8, 0.0, %v1155_v33 }
 0x384   :  { %v3883_v54 = vperm.slane %v1156_v15, %v3268_v31 }
 0x387   :  { %1327 = vrot.lane.b32.xlu1 %v1168_v46, %s3125_s28  ;;  %v3902_v46 = vperm.slane %v3768_v32, %v3268_v31 }
 0x389   :  { %v1127_v15 = vrot.slane %v3902_v46, 4 }
 0x38a   :  { %2446 = vrot.lane.b32.xlu2 %v2231_v14, %s3124_s27 }
 0x38b   :  { %1467 = vrot.lane.b32.xlu0 %v1056_v52, %s3123_s26  ;;  %v1128_v32 = vsel %vm983_vm8, 0.0, %v1127_v15 }
 0x38f   :  { %1375 = vrot.lane.b32.xlu1 %v3883_v54, %s3126_s13 }
 0x392   :  { %1407 = vrot.lane.b32.xlu2 %v1204_v49, %s3120_s0 }
 0x393   :  { %1293 = vrot.lane.b32.xlu0 %v1090_v51, %s3120_s0  ;;  %v3931_v51 = vpop.permute.xlu2 %1339 }
 0x397   :  { %v2061_v33 = vpop.permute.xlu0 %2060  ;;  %1423 = vrot.lane.b32.xlu1 %v3895_v21, %s3121_s1 }
 0x398   :  { %v2165_v56 = vsel %vm412_vm7, %v3711_v27, %v2061_v33 }
 0x399   :  { %v2169_v34 = vsel %vm1515_vm6, %v2165_v56, %v3747_v62  ;;  %v3944_v56 = vpop.permute.xlu1 %1355 }
 0x39a   :  { %v2173_v52 = vsel %vm1520_vm9, %v2169_v34, %v3742_v20  ;;  %v1133_v20 = vrot.slane %v3809_v47, 4  ;;  %v2226_v47 = vrot.slane %v3832_v1, 4 }
 0x39b   :  { %1357 = vrot.lane.b32.xlu0 %v1094_v39, %s3123_s26  ;;  %v3936_v19 = vpop.permute.xlu2 %1387 }
 0x39f   :  { %v2109_v14 = vpop.permute.xlu0 %2108 }
 0x3a0   :  { %v2177_v7 = vsel %vm1525_vm10, %v2173_v52, %v2109_v14  ;;  %v2227_v14 = vsel %vm983_vm8, 0.0, %v2226_v47 }
 0x3a1   :  { %v2181_v27 = vsel %vm1530_vm11, %v2177_v7, %v3758_v36  ;;  %v1134_v36 = vsel %vm983_vm8, 0.0, %v1133_v20  ;;  %v884_v7 = vld [vmem:[#allocation8 + $0x10] sm:$0xff] }
 0x3a2   :  { %v2185_v49 = vsel %vm1535_vm12, %v2181_v27, %v3749_v45  ;;  %v1174_v45 = vsel %vm983_vm8, 0.0, %v1173_v26 }
 0x3a3   :  { %1405 = vrot.lane.b32.xlu0 %v1128_v32, %s3120_s0  ;;  %v1182_v33 = vperm.slane %v1174_v45, %v3266_v29  ;;  %v3946_v38 = vpop.permute.xlu2 %1435  ;;  %v1205_v45 = vrot.slane %v3895_v21, 4 }
 0x3a5   :  { %v1193_v39 = vrot.slane %v1182_v33, 4 }
 0x3a7   :  { %v2157_v37 = vpop.permute.xlu0 %2156  ;;  %v1194_v34 = vsel %vm983_vm8, 0.0, %v1193_v39 }
 0x3a8   :  { %v2189_v62 = vsel %vm1540_vm13, %v2185_v49, %v2157_v37  ;;  %v1202_v52 = vperm.slane %v1194_v34, %v3268_v31  ;;  %v3956_v37 = vpop.permute.xlu1 %1403 }
 0x3a9   :  { %2193 = vst [vmem:[%s4568_s12 + $0xc] sm:$0x1] %v2189_v62  ;;  %v1171_v62 = vrot.slane %v3883_v54, 4  ;;  %v1545_v43 = vsel %vm412_vm7, %v3695_v57, %v3956_v37 }
 0x3aa   :  { %v1209_v1 = vrot.slane %v1202_v52, 4 }
 0x3ab   :  { %1453 = vrot.lane.b32.xlu0 %v3786_v41, %s3122_s25  ;;  %v1198_v41 = vperm.slane %v1182_v33, %v3268_v31  ;;  %v3958_v49 = vpop.permute.xlu2 %1483  ;;  %v1172_v20 = vsel %vm983_vm8, 0.0, %v1171_v62 }
 0x3ac   :  { %v1210_v27 = vsel %vm983_vm8, 0.0, %v1209_v1 }
 0x3ad   :  { %1455 = vrot.lane.b32.xlu2 %v1198_v41, %s3122_s25  ;;  %v1207_v15 = vrot.slane %v1198_v41, 4  ;;  %v1206_v41 = vsel %vm983_vm8, 0.0, %v1205_v45 }
 0x3af   :  { %v1208_v32 = vsel %vm983_vm8, 0.0, %v1207_v15 }
 0x3b0   :  { %1471 = vrot.lane.b32.xlu1 %v1208_v32, %s3123_s26 }
 0x3b3   :  { %1501 = vrot.lane.b32.xlu0 %v1134_v36, %s3124_s27  ;;  %v3964_v36 = vpop.permute.xlu1 %1451  ;;  %v3968_v33 = vpop.permute.xlu2 %1325 }
 0x3b5   :  { %1503 = vrot.lane.b32.xlu2 %v1210_v27, %s3124_s27 }
 0x3bb   :  { %1343 = vrot.lane.b32.xlu0 %v3849_v63, %s3122_s25  ;;  %v885_v63 = vld [vmem:[#allocation8 + $0x18] sm:$0xff]  ;;  %v3979_v27 = vpop.permute.xlu2 %1373 }
 0x3bc   :  { %930 = vmatpush.msra.mxu3 %v885_v63 }
 0x3be   :  { %931 = vmatpush.msra.mxu3 %v884_v7 }
 0x3c3   :  { %2382 = vrot.lane.b32.xlu0 %v2227_v14, %s3125_s28  ;;  %v3974_v14 = vpop.permute.xlu1 %1499 }
 0x3cb   :  { %2430 = vrot.lane.b32.xlu0 %v3860_v55, %s3126_s13 }
 0x3d2   :  { %v442_v26 = vpop.xlane.xlu0 %441 }
 0x3d3   :  { %2903 = vrcp.f32 %v442_v26  ;;  %1391 = vrot.lane.b32.xlu0 %v1172_v20, %s3124_s27  ;;  %v475_v32 = vand.u32 2147483648, %v442_v26  ;;  %v473_v1 = vand.u32 2147483647, %v442_v26  ;;  %vm469_vm0 = vweird.f32 %v442_v26 }
 0x3d5   :  { %v476_v20 = vor.u32 1.1754944e-38, %v475_v32  ;;  %vm474_vm3 = vcmp.eq.f32.partialorder %v473_v1, 8.507059e+37 }
 0x3d7   :  { %v876_v39 = vpop.f32.mrf.mxu3 }
 0x3d8   :  { %v1211_v47 = vrot.slane %v876_v39, 4 }
 0x3d9   :  { %v2904_v15 = vpop.eup %2903 }
 0x3da   :  { %v465_v55 = vmul.f32 %v2904_v15, %v442_v26  ;;  %v1212_v54 = vsel %vm983_vm8, 0.0, %v1211_v47  ;;  %vm470_vm15 = vweird.f32 %v2904_v15 }
 0x3db   :  { %1439 = vrot.lane.b32.xlu0 %v1206_v41, %s3125_s28  ;;  %v1220_v34 = vperm.slane %v1212_v54, %v3266_v29  ;;  %vm471_vm2 = vmor %vm469_vm0, %vm470_vm15  ;;  %v3985_v54 = vpop.permute.xlu1 %1309 }
 0x3dc   :  { %v466_v63 = vsub.f32 1.0, %v465_v55 }
 0x3dd   :  { %v3977_v21 = vperm.slane %v1220_v34, %v3268_v31  ;;  %v1231_v2 = vrot.slane %v1220_v34, 4 }
 0x3de   :  { %v467_v7 = vmul.f32 %v2904_v15, %v466_v63 }
 0x3df   :  { %1345 = vrot.lane.b32.xlu2 %v3977_v21, %s3122_s25  ;;  %v879_v3 = vpop.f32.mrf.mxu3 }
 0x3e0   :  { %v468_v62 = vadd.f32 %v2904_v15, %v467_v7  ;;  %v1216_v7 = vperm.slane %v876_v39, %v3266_v29  ;;  %v4019_v34 = vperm.slane %v879_v3, %v3266_v29 }
 0x3e2   :  { %v472_v45 = vsel %vm471_vm2, %v2904_v15, %v468_v62  ;;  %v3993_v15 = vpop.permute.xlu2 %1421  ;;  %v1221_v1 = vrot.slane %v1216_v7, 4 }
 0x3e3   :  { %v477_v41 = vsel %vm474_vm3, %v476_v20, %v472_v45  ;;  %1487 = vrot.lane.b32.xlu0 %v1202_v52, %s3126_s13 }
 0x3e4   :  { %v478_v47 = vmul.f32 %v3791_v24, %v477_v41 }
 0x3e5   :  { %v1324_v55 = vpop.permute.xlu0 %1323 }
 0x3e6   :  { %2839 = vmatmul.msk.f32.vlgmr.msra.gmra.mxu3 %vm412_vm7, %v478_v47  ;;  %v2237_v63 = vperm.slane %v478_v47, %v3266_v29  ;;  %v2232_v35 = vrot.slane %v478_v47, 4 }
 0x3e8   :  { %v2242_v26 = vrot.slane %v2237_v63, 4  ;;  %v3991_v32 = vperm.slane %v2237_v63, %v3268_v31  ;;  %v2233_v52 = vsel %vm983_vm8, 0.0, %v2232_v35  ;;  %v1222_v35 = vsel %vm983_vm8, 0.0, %v1221_v1 }
 0x3e9   :  { %v2241_v20 = vperm.slane %v2233_v52, %v3266_v29  ;;  %v4016_v1 = vperm.slane %v1216_v7, %v3268_v31 }
 0x3ea   :  { %v2243_v24 = vsel %vm983_vm8, 0.0, %v2242_v26  ;;  %v2262_v62 = vrot.slane %v3991_v32, 4  ;;  %v4005_v26 = vpop.permute.xlu1 %1341 }
 0x3eb   :  { %v2251_v45 = vperm.slane %v2243_v24, %v3268_v31  ;;  %v2257_v47 = vperm.slane %v2241_v20, %v3268_v31  ;;  %v2252_v52 = vrot.slane %v2241_v20, 4  ;;  %v1232_v20 = vsel %vm983_vm8, 0.0, %v1231_v2 }
 0x3ec   :  { %v2263_v39 = vsel %vm983_vm8, 0.0, %v2262_v62  ;;  %v1230_v62 = vperm.slane %v1222_v35, %v3268_v31  ;;  %v1516_v35 = vsel %vm1515_vm6, %v1511_v0, %v3920_v5  ;;  %v1240_v7 = vperm.slane %v1232_v20, %v3268_v31 }
 0x3ed   :  { %v1372_v41 = vpop.permute.xlu0 %1371  ;;  %2368 = vrot.lane.b32.xlu0 %v2251_v45, %s3121_s1  ;;  %2352 = vrot.lane.b32.xlu1 %v2263_v39, %s3120_s0  ;;  %v2264_v63 = vrot.slane %v2251_v45, 4  ;;  %v2266_v24 = vrot.slane %v2257_v47, 4  ;;  %v4013_v39 = vpop.permute.xlu2 %1469  ;;  %v2253_v45 = vsel %vm983_vm8, 0.0, %v2252_v52  ;;  %v1241_v0 = vrot.slane %v4016_v1, 4 }
 0x3ee   :  { %v1243_v8 = vrot.slane %v1230_v62, 4  ;;  %v4034_v52 = vperm.slane %v2253_v45, %v3268_v31  ;;  %v1521_v5 = vsel %vm1520_vm9, %v1516_v35, %v1324_v55  ;;  %v1247_v20 = vrot.slane %v1240_v7, 4 }
 0x3ef   :  { %v2265_v53 = vsel %vm983_vm8, 0.0, %v2264_v63  ;;  %v2267_v63 = vsel %vm983_vm8, 0.0, %v2266_v24  ;;  %v1259_v24 = vrot.slane %v4019_v34, 4  ;;  %v1526_v45 = vsel %vm1525_vm10, %v1521_v5, %v3931_v51 }
 0x3f0   :  { %2384 = vrot.lane.b32.xlu2 %v2265_v53, %s3125_s28  ;;  %v1248_v51 = vsel %vm983_vm8, 0.0, %v1247_v20 }
 0x3f2   :  { %v4041_v57 = vpop.permute.xlu1 %1389 }
 0x3f5   :  { %v1420_v53 = vpop.permute.xlu0 %1419  ;;  %2416 = vrot.lane.b32.xlu0 %v2267_v63, %s3123_s26  ;;  %2400 = vrot.lane.b32.xlu1 %v2257_v47, %s3122_s25  ;;  %v1249_v47 = vrot.slane %v879_v3, 4  ;;  %v1244_v63 = vsel %vm983_vm8, 0.0, %v1243_v8  ;;  %v4050_v55 = vpop.permute.xlu2 %2350 }
 0x3f6   :  { %v1549_v2 = vsel %vm1515_vm6, %v1545_v43, %v1420_v53  ;;  %v1260_v53 = vsel %vm983_vm8, 0.0, %v1259_v24  ;;  %v1242_v43 = vsel %vm983_vm8, 0.0, %v1241_v0 }
 0x3f7   :  { %v1553_v37 = vsel %vm1520_vm9, %v1549_v2, %v3946_v38  ;;  %v1531_v38 = vsel %vm1530_vm11, %v1526_v45, %v3944_v56  ;;  %v1268_v8 = vperm.slane %v1260_v53, %v3268_v31  ;;  %v1250_v24 = vsel %vm983_vm8, 0.0, %v1249_v47 }
 0x3f8   :  { %2432 = vrot.lane.b32.xlu2 %v4034_v52, %s3126_s13  ;;  %v1557_v11 = vsel %vm1525_vm10, %v1553_v37, %v3964_v36  ;;  %v1536_v2 = vsel %vm1535_vm12, %v1531_v38, %v1372_v41  ;;  %v1258_v37 = vperm.slane %v1250_v24, %v3266_v29 }
 0x3f9   :  { %v1541_v41 = vsel %vm1540_vm13, %v1536_v2, %v3936_v19  ;;  %v1281_v47 = vrot.slane %v1268_v8, 4  ;;  %v1245_v19 = vrot.slane %v3977_v21, 4 }
 0x3fa   :  { %v1438_v20 = vpop.permute.xlu1 %1437  ;;  %v1269_v45 = vrot.slane %v1258_v37, 4  ;;  %v4089_v38 = vperm.slane %v1258_v37, %v3268_v31 }
 0x3fb   :  { %v1282_v53 = vsel %vm983_vm8, 0.0, %v1281_v47 }
 0x3fc   :  { %v1283_v21 = vrot.slane %v4089_v38, 4 }
 0x3fd   :  { %v1468_v35 = vpop.permute.xlu0 %1467  ;;  %1329 = vrot.lane.b32.xlu0 %v1244_v63, %s3125_s28  ;;  %1297 = vrot.lane.b32.xlu1 %v1242_v43, %s3120_s0  ;;  %v4082_v63 = vpop.permute.xlu2 %2398  ;;  %v1270_v43 = vsel %vm983_vm8, 0.0, %v1269_v45 }
 0x3fe   :  { %v1561_v3 = vsel %vm1530_vm11, %v1557_v11, %v1468_v35  ;;  %v4577_v11 = vlaneseq  ;;  %v1246_v35 = vsel %vm983_vm8, 0.0, %v1245_v19 }
 0x3ff   :  { %v1565_v36 = vsel %vm1535_vm12, %v1561_v3, %v3958_v49 }
 0x400   :  { %v1569_v56 = vsel %vm1540_vm13, %v1565_v36, %v3974_v14  ;;  %vm4068_vm4 = vcmp.lt.s32.totalorder %v4577_v11, 256  ;;  %1393 = vrot.lane.b32.xlu2 %v1248_v51, %s3124_s27  ;;  %v4095_v51 = vperm.slane %v1270_v43, %v3268_v31  ;;  %v4108_v11 = vperm.slane %v4019_v34, %v3268_v31 }
 0x401   :  { %v1581_v5 = vrot.slane %v1569_v56, 7  ;;  %v2268_v56 = vrot.slane %v4034_v52, 4 }
 0x402   :  { %v1486_v2 = vpop.permute.xlu1 %1485  ;;  %v1279_v34 = vrot.slane %v4108_v11, 4 }
 0x403   :  { %v1586_v49 = vsel %vm1585_vm1, %v1541_v41, %v1581_v5  ;;  %v2269_v47 = vsel %vm983_vm8, 0.0, %v2268_v56 }
 0x404   :  { %1598 = vst.msk [vmem:[#allocation13] sm:$0x3] %vm4068_vm4, %v1586_v49 }
 0x405   :  { %v1294_v14 = vpop.permute.xlu0 %1293  ;;  %1377 = vrot.lane.b32.xlu0 %v1240_v7, %s3126_s13  ;;  %1313 = vrot.lane.b32.xlu1 %v1230_v62, %s3121_s1  ;;  %v2275_v7 = vperm.slane %v3789_v58, %v3266_v29  ;;  %v2270_v62 = vrot.slane %v3789_v58, 4  ;;  %v4100_v36 = vpop.permute.xlu2 %1311 }
 0x407   :  { %v2280_v24 = vrot.slane %v2275_v7, 4  ;;  %v2271_v58 = vsel %vm983_vm8, 0.0, %v2270_v62  ;;  %v4115_v49 = vperm.slane %v2275_v7, %v3268_v31 }
 0x408   :  { %1441 = vrot.lane.b32.xlu2 %v1282_v53, %s3125_s28  ;;  %v2279_v41 = vperm.slane %v2271_v58, %v3266_v29  ;;  %v1512_v53 = vsel %vm412_vm7, %v3872_v6, %v1294_v14  ;;  %v1280_v6 = vsel %vm983_vm8, 0.0, %v1279_v34 }
 0x409   :  { %v2281_v5 = vsel %vm983_vm8, 0.0, %v2280_v24  ;;  %v1517_v62 = vsel %vm1515_vm6, %v1512_v53, %v3985_v54 }
 0x40a   :  { %v4120_v52 = vperm.slane %v2281_v5, %v3268_v31  ;;  %v4123_v45 = vpop.permute.xlu1 %2366  ;;  %v2295_v43 = vperm.slane %v2279_v41, %v3268_v31  ;;  %v1522_v58 = vsel %vm1520_vm9, %v1517_v62, %v3968_v33  ;;  %v2290_v54 = vrot.slane %v2279_v41, 4 }
 0x40b   :  { %v1527_v34 = vsel %vm1525_vm10, %v1522_v58, %v4005_v26 }
 0x40c   :  { %v2304_v14 = vrot.slane %v2295_v43, 4 }
 0x40d   :  { %v1358_v3 = vpop.permute.xlu0 %1357  ;;  %1425 = vrot.lane.b32.xlu0 %v1268_v8, %s3121_s1  ;;  %1361 = vrot.lane.b32.xlu1 %v1246_v35, %s3123_s26  ;;  %v1284_v8 = vsel %vm983_vm8, 0.0, %v1283_v21  ;;  %v2300_v35 = vrot.slane %v4115_v49, 4  ;;  %v4133_v7 = vpop.permute.xlu2 %1359 }
 0x40f   :  { %v2301_v56 = vsel %vm983_vm8, 0.0, %v2300_v35 }
 0x410   :  { %1489 = vrot.lane.b32.xlu2 %v4095_v51, %s3126_s13 }
 0x412   :  { %v4157_v33 = vpop.permute.xlu1 %1295 }
 0x415   :  { %v1406_v37 = vpop.permute.xlu0 %1405  ;;  %1473 = vrot.lane.b32.xlu0 %v1284_v8, %s3123_s26  ;;  %2448 = vrot.lane.b32.xlu1 %v2269_v47, %s3124_s27  ;;  %v4165_v35 = vpop.permute.xlu2 %2446 }
 0x416   :  { %v1546_v19 = vsel %vm412_vm7, %v3902_v46, %v1406_v37  ;;  %v2313_v46 = vperm.slane %v3818_v18, %v3266_v29  ;;  %v2305_v37 = vsel %vm983_vm8, 0.0, %v2304_v14 }
 0x417   :  { %v1550_v21 = vsel %vm1515_vm6, %v1546_v19, %v3993_v15  ;;  %v2308_v15 = vrot.slane %v3818_v18, 4  ;;  %v2291_v18 = vsel %vm983_vm8, 0.0, %v2290_v54 }
 0x418   :  { %2370 = vrot.lane.b32.xlu2 %v4120_v52, %s3121_s1  ;;  %v1554_v8 = vsel %vm1520_vm9, %v1550_v21, %v1438_v20  ;;  %v4152_v47 = vperm.slane %v2313_v46, %v3268_v31  ;;  %v1532_v20 = vsel %vm1530_vm11, %v1527_v34, %v1358_v3  ;;  %v2318_v14 = vrot.slane %v2313_v46, 4 }
 0x419   :  { %v2309_v53 = vsel %vm983_vm8, 0.0, %v2308_v15  ;;  %v1537_v26 = vsel %vm1535_vm12, %v1532_v20, %v3979_v27 }
 0x41a   :  { %v2338_v19 = vrot.slane %v4152_v47, 4  ;;  %v2317_v3 = vperm.slane %v2309_v53, %v3266_v29  ;;  %v1542_v27 = vsel %vm1540_vm13, %v1537_v26, %v4041_v57  ;;  %v2415_v46 = vpop.permute.xlu1 %2414 }
 0x41c   :  { %v2328_v54 = vrot.slane %v2317_v3, 4  ;;  %v2333_v34 = vperm.slane %v2317_v3, %v3268_v31 }
 0x41d   :  { %v1454_v24 = vpop.permute.xlu0 %1453  ;;  %1409 = vrot.lane.b32.xlu1 %v1280_v6, %s3120_s0  ;;  %2354 = vrot.lane.b32.xlu0 %v2301_v56, %s3120_s0  ;;  %v2299_v6 = vperm.slane %v2291_v18, %v3268_v31  ;;  %v1285_v56 = vrot.slane %v4095_v51, 4  ;;  %v2302_v18 = vrot.slane %v4120_v52, 4 }
 0x41e   :  { %v1558_v5 = vsel %vm1525_vm10, %v1554_v8, %v1454_v24 }
 0x41f   :  { %v1562_v41 = vsel %vm1530_vm11, %v1558_v5, %v4013_v39  ;;  %v2306_v8 = vrot.slane %v2299_v6, 4  ;;  %v2329_v5 = vsel %vm983_vm8, 0.0, %v2328_v54 }
 0x420   :  { %2418 = vrot.lane.b32.xlu2 %v2305_v37, %s3123_s26  ;;  %v1566_v21 = vsel %vm1535_vm12, %v1562_v41, %v1486_v2  ;;  %v2339_v2 = vsel %vm983_vm8, 0.0, %v2338_v19  ;;  %v1408_v37 = vpop.permute.xlu2 %1407  ;;  %v2337_v20 = vperm.slane %v2329_v5, %v3268_v31  ;;  %v910_v41 = vpop.f32.mrf.mxu2 }
 0x421   :  { %v2307_v57 = vsel %vm983_vm8, 0.0, %v2306_v8  ;;  %v1607_v19 = vperm.slane %v910_v41, %v3266_v29 }
 0x422   :  { %v2344_v26 = vrot.slane %v2337_v20, 4 }
 0x423   :  { %v4216_v54 = vperm.slane %v1607_v19, %v3268_v31 }
 0x425   :  { %v1502_v62 = vpop.permute.xlu0 %1501  ;;  %1457 = vrot.lane.b32.xlu1 %v4089_v38, %s3122_s25  ;;  %2402 = vrot.lane.b32.xlu0 %v2295_v43, %s3122_s25  ;;  %v2319_v38 = vsel %vm983_vm8, 0.0, %v2318_v14  ;;  %v1286_v43 = vsel %vm983_vm8, 0.0, %v1285_v56  ;;  %v2303_v14 = vsel %vm983_vm8, 0.0, %v2302_v18  ;;  %v1328_v56 = vpop.permute.xlu1 %1327 }
 0x426   :  { %v1570_v39 = vsel %vm1540_vm13, %v1566_v21, %v1502_v62  ;;  %v2327_v15 = vperm.slane %v2319_v38, %v3268_v31  ;;  %v2458_v62 = vsel %vm412_vm7, %v3812_v4, %v4050_v55  ;;  %v1602_v21 = vrot.slane %v910_v41, 4 }
 0x427   :  { %v1582_v24 = vrot.slane %v1570_v39, 7  ;;  %v2345_v4 = vsel %vm983_vm8, 0.0, %v2344_v26 }
 0x428   :  { %2356 = vrot.lane.b32.xlu2 %v2339_v2, %s3120_s0  ;;  %v2340_v53 = vrot.slane %v2327_v15, 4  ;;  %v1456_v52 = vpop.permute.xlu2 %1455  ;;  %v1612_v2 = vrot.slane %v1607_v19, 4  ;;  %v1603_v55 = vsel %vm983_vm8, 0.0, %v1602_v21 }
 0x429   :  { %v1587_v58 = vsel %vm1585_vm1, %v1542_v27, %v1582_v24  ;;  %v2462_v24 = vsel %vm1515_vm6, %v2458_v62, %v4123_v45  ;;  %v1611_v45 = vperm.slane %v1603_v55, %v3266_v29  ;;  %v2342_v62 = vrot.slane %v2333_v34, 4 }
 0x42a   :  { %1599 = vst.msk [vmem:[#allocation13 + $0x2] sm:$0x3] %vm4068_vm4, %v1587_v58  ;;  %v2341_v3 = vsel %vm983_vm8, 0.0, %v2340_v53  ;;  %v1613_v8 = vsel %vm983_vm8, 0.0, %v1612_v2 }
 0x42b   :  { %v1621_v5 = vperm.slane %v1613_v8, %v3268_v31  ;;  %v1622_v41 = vrot.slane %v1611_v45, 4 }
 0x42d   :  { %v4186_v51 = vpop.permute.xlu0 %1343  ;;  %1505 = vrot.lane.b32.xlu1 %v1286_v43, %s3124_s27  ;;  %2450 = vrot.lane.b32.xlu0 %v2307_v57, %s3124_s27  ;;  %v1376_v18 = vpop.permute.xlu1 %1375 }
 0x430   :  { %2404 = vrot.lane.b32.xlu2 %v2333_v34, %s3122_s25  ;;  %v1504_v53 = vpop.permute.xlu2 %1503 }
 0x435   :  { %v2383_v39 = vpop.permute.xlu0 %2382  ;;  %2386 = vrot.lane.b32.xlu1 %v2303_v14, %s3125_s28  ;;  %2388 = vrot.lane.b32.xlu0 %v2341_v3, %s3125_s28  ;;  %v1513_v3 = vsel %vm412_vm7, %v3828_v48, %v4157_v33  ;;  %v1634_v33 = vrot.slane %v1621_v5, 4  ;;  %s3129_s28 = smov [#allocation14]  }
 0x436   :  { %v2466_v27 = vsel %vm1520_vm9, %v2462_v24, %v2383_v39  ;;  %v1424_v39 = vpop.permute.xlu1 %1423  ;;  %v1547_v24 = vsel %vm412_vm7, %v3875_v12, %v1408_v37  ;;  %v1518_v55 = vsel %vm1515_vm6, %v1513_v3, %v4100_v36 }
 0x437   :  { %v2470_v58 = vsel %vm1525_vm10, %v2466_v27, %v4082_v63  ;;  %v2343_v27 = vsel %vm983_vm8, 0.0, %v2342_v62  ;;  %v1523_v48 = vsel %vm1520_vm9, %v1518_v55, %v1328_v56 }
 0x438   :  { %2452 = vrot.lane.b32.xlu2 %v2345_v4, %s3124_s27  ;;  %v2474_v43 = vsel %vm1530_vm11, %v2470_v58, %v2415_v46  ;;  %v1632_v46 = vrot.slane %v4216_v54, 4  ;;  %v1551_v4 = vsel %vm1515_vm6, %v1547_v24, %v1424_v39  ;;  %v1528_v12 = vsel %vm1525_vm10, %v1523_v48, %v4186_v51 }
 0x439   :  { %v4240_v14 = vpop.permute.xlu2 %1345 }
 0x43a   :  { %v1633_v26 = vsel %vm983_vm8, 0.0, %v1632_v46 }
 0x43d   :  { %v2431_v38 = vpop.permute.xlu0 %2430  ;;  %2434 = vrot.lane.b32.xlu1 %v2299_v6, %s3126_s13  ;;  %2436 = vrot.lane.b32.xlu0 %v2337_v20, %s3126_s13  ;;  %v1623_v6 = vsel %vm983_vm8, 0.0, %v1622_v41  ;;  %v4232_v20 = vperm.slane %v1611_v45, %v3268_v31  ;;  %v1533_v45 = vsel %vm1530_vm11, %v1528_v12, %v4133_v7 }
 0x43e   :  { %v2478_v57 = vsel %vm1535_vm12, %v2474_v43, %v2431_v38  ;;  %v1472_v58 = vpop.permute.xlu1 %1471  ;;  %v1538_v51 = vsel %vm1535_vm12, %v1533_v45, %v1376_v18 }
 0x43f   :  { %v2482_v63 = vsel %vm1540_vm13, %v2478_v57, %v4165_v35  ;;  %v1631_v35 = vperm.slane %v1623_v6, %v3268_v31  ;;  %v1636_v21 = vrot.slane %v4232_v20, 4  ;;  %v1635_v57 = vsel %vm983_vm8, 0.0, %v1634_v33 }
 0x440   :  { %2486 = vst [vmem:[%s4568_s12 + $0x1] sm:$0x1] %v2482_v63  ;;  %1774 = vrot.lane.b32.xlu2 %v1621_v5, %s3122_s25 }
 0x441   :  { %v1637_v2 = vsel %vm983_vm8, 0.0, %v1636_v21  ;;  %v1638_v63 = vrot.slane %v1631_v35, 4 }
 0x443   :  { %v1639_v41 = vsel %vm983_vm8, 0.0, %v1638_v63 }
 0x445   :  { %v1392_v19 = vpop.permute.xlu0 %1391  ;;  %2372 = vrot.lane.b32.xlu1 %v2327_v15, %s3121_s1  ;;  %1758 = vrot.lane.b32.xlu0 %v1633_v26, %s3121_s1 }
 0x446   :  { %v1543_v5 = vsel %vm1540_vm13, %v1538_v51, %v1392_v19 }
 0x448   :  { %1822 = vrot.lane.b32.xlu2 %v1631_v35, %s3122_s25  ;;  %v956_v35 = vpop.f32.mrf.mxu0 }
 0x44a   :  { %v4261_v8 = vpop.permute.xlu2 %2384 }
 0x44d   :  { %v1440_v15 = vpop.permute.xlu0 %1439  ;;  %2420 = vrot.lane.b32.xlu1 %v2343_v27, %s3123_s26  ;;  %1806 = vrot.lane.b32.xlu0 %v1637_v2, %s3121_s1  ;;  %v1683_v27 = vperm.slane %v956_v35, %v3266_v29 }
 0x44e   :  { %v1555_v34 = vsel %vm1520_vm9, %v1551_v4, %v1440_v15  ;;  %v1678_v4 = vrot.slane %v956_v35, 4 }
 0x44f   :  { %v1559_v37 = vsel %vm1525_vm10, %v1555_v34, %v1456_v52 }
 0x450   :  { %v1563_v38 = vsel %vm1530_vm11, %v1559_v37, %v1472_v58 }
 0x452   :  { %v4275_v46 = vpop.permute.xlu2 %2432 }
 0x455   :  { %v1488_v43 = vpop.permute.xlu0 %1487  ;;  %1790 = vrot.lane.b32.xlu1 %v1635_v57, %s3126_s13 }
 0x456   :  { %v1567_v36 = vsel %vm1535_vm12, %v1563_v38, %v1488_v43  ;;  %v1688_v38 = vrot.slane %v1683_v27, 4 }
 0x457   :  { %v1571_v56 = vsel %vm1540_vm13, %v1567_v36, %v1504_v53  ;;  %v1679_v36 = vsel %vm983_vm8, 0.0, %v1678_v4 }
 0x458   :  { %v1583_v52 = vrot.slane %v1571_v56, 7  ;;  %v1687_v63 = vperm.slane %v1679_v36, %v3266_v29 }
 0x45a   :  { %v1588_v7 = vsel %vm1585_vm1, %v1543_v5, %v1583_v52  ;;  %v4281_v62 = vpop.permute.xlu2 %1393 }
 0x45b   :  { %1600 = vst.msk [vmem:[#allocation13 + $0x4] sm:$0x3] %vm4068_vm4, %v1588_v7  ;;  %v1689_v7 = vsel %vm983_vm8, 0.0, %v1688_v38 }
 0x45c   :  { %v1697_v35 = vperm.slane %v1689_v7, %v3268_v31 }
 0x45d   :  { %1838 = vrot.lane.b32.xlu1 %v1639_v41, %s3126_s13 }
 0x45f   :  { %v2369_v6 = vpop.permute.xlu0 %2368  ;;  %v2353_v26 = vpop.permute.xlu1 %2352 }
 0x460   :  { %v2459_v4 = vsel %vm412_vm7, %v3991_v32, %v2353_v26 }
 0x462   :  { %v4305_v56 = vpop.permute.xlu2 %1441 }
 0x467   :  { %v4277_v53 = vpop.permute.xlu0 %2416  ;;  %v4279_v18 = vpop.permute.xlu1 %2400 }
 0x469   :  { %v933_v19 = vpop.f32.mrf.mxu3 }
 0x46a   :  { %v1640_v21 = vrot.slane %v933_v19, 4  ;;  %v1645_v39 = vperm.slane %v933_v19, %v3266_v29  ;;  %v4314_v19 = vperm.slane %v1683_v27, %v3268_v31 }
 0x46c   :  { %v1641_v3 = vsel %vm983_vm8, 0.0, %v1640_v21  ;;  %v1650_v24 = vrot.slane %v1645_v39, 4  ;;  %v4286_v15 = vperm.slane %v1645_v39, %v3268_v31 }
 0x46d   :  { %v1649_v2 = vperm.slane %v1641_v3, %v3266_v29 }
 0x46e   :  { %v1651_v34 = vsel %vm983_vm8, 0.0, %v1650_v24  ;;  %v1670_v55 = vrot.slane %v4286_v15, 4  ;;  %v1698_v24 = vrot.slane %v1687_v63, 4 }
 0x46f   :  { %v1659_v48 = vperm.slane %v1651_v34, %v3268_v31  ;;  %v1660_v33 = vrot.slane %v1649_v2, 4  ;;  %v4294_v12 = vperm.slane %v1649_v2, %v3268_v31  ;;  %v4296_v37 = vpop.permute.xlu0 %1329  ;;  %v4298_v58 = vpop.permute.xlu1 %1297  ;;  %v1708_v34 = vrot.slane %v4314_v19, 4 }
 0x470   :  { %v1671_v45 = vsel %vm983_vm8, 0.0, %v1670_v55  ;;  %v979_v2 = vpop.f32.mrf.mxu2  ;;  %v1710_v55 = vrot.slane %v1697_v35, 4 }
 0x471   :  { %v1661_v43 = vsel %vm983_vm8, 0.0, %v1660_v33  ;;  %1760 = vrot.lane.b32.xlu2 %v1671_v45, %s3121_s1  ;;  %1776 = vrot.lane.b32.xlu1 %v1659_v48, %s3122_s25  ;;  %v1672_v57 = vrot.slane %v1659_v48, 4  ;;  %v1674_v5 = vrot.slane %v4294_v12, 4  ;;  %v1699_v48 = vsel %vm983_vm8, 0.0, %v1698_v24  ;;  %v4331_v45 = vpop.permute.xlu2 %1489 }
 0x472   :  { %v1669_v52 = vperm.slane %v1661_v43, %v3268_v31  ;;  %v1721_v33 = vperm.slane %v979_v2, %v3266_v29  ;;  %v1716_v38 = vrot.slane %v979_v2, 4  ;;  %v2463_v43 = vsel %vm1515_vm6, %v2459_v4, %v2369_v6 }
 0x473   :  { %v1673_v51 = vsel %vm983_vm8, 0.0, %v1672_v57  ;;  %v1675_v3 = vsel %vm983_vm8, 0.0, %v1674_v5  ;;  %v4335_v57 = vperm.slane %v1687_v63, %v3268_v31  ;;  %v1709_v36 = vsel %vm983_vm8, 0.0, %v1708_v34 }
 0x474   :  { %1792 = vrot.lane.b32.xlu0 %v1673_v51, %s3126_s13  ;;  %v1676_v41 = vrot.slane %v1669_v52, 4  ;;  %v1711_v51 = vsel %vm983_vm8, 0.0, %v1710_v55  ;;  %v1726_v5 = vrot.slane %v1721_v33, 4  ;;  %v2467_v7 = vsel %vm1520_vm9, %v2463_v43, %v4261_v8 }
 0x475   :  { %v1717_v6 = vsel %vm983_vm8, 0.0, %v1716_v38  ;;  %v2471_v63 = vsel %vm1525_vm10, %v2467_v7, %v4279_v18 }
 0x476   :  { %v1677_v27 = vsel %vm983_vm8, 0.0, %v1676_v41  ;;  %v1712_v41 = vrot.slane %v4335_v57, 4  ;;  %v1725_v24 = vperm.slane %v1717_v6, %v3266_v29  ;;  %v1727_v2 = vsel %vm983_vm8, 0.0, %v1726_v5 }
 0x477   :  { %v4317_v21 = vpop.permute.xlu0 %1377  ;;  %v4319_v39 = vpop.permute.xlu1 %1313  ;;  %v2475_v8 = vsel %vm1530_vm11, %v2471_v63, %v4277_v53  ;;  %v4369_v53 = vperm.slane %v1721_v33, %v3268_v31 }
 0x478   :  { %v2479_v18 = vsel %vm1535_vm12, %v2475_v8, %v4275_v46  ;;  %v1736_v38 = vrot.slane %v1725_v24, 4  ;;  %v4379_v33 = vperm.slane %v1725_v24, %v3268_v31 }
 0x479   :  { %1808 = vrot.lane.b32.xlu2 %v1675_v3, %s3121_s1  ;;  %1824 = vrot.lane.b32.xlu1 %v1669_v52, %s3122_s25  ;;  %v1707_v52 = vperm.slane %v1699_v48, %v3268_v31  ;;  %v4355_v4 = vpop.permute.xlu2 %2370 }
 0x47a   :  { %v1737_v43 = vsel %vm983_vm8, 0.0, %v1736_v38 }
 0x47b   :  { %v1714_v3 = vrot.slane %v1707_v52, 4  ;;  %v1745_v6 = vperm.slane %v1737_v43, %v3268_v31 }
 0x47c   :  { %1840 = vrot.lane.b32.xlu0 %v1677_v27, %s3126_s13  ;;  %v1735_v27 = vperm.slane %v1727_v2, %v3268_v31  ;;  %v1514_v2 = vsel %vm412_vm7, %v4016_v1, %v4298_v58  ;;  %v1750_v31 = vrot.slane %v4379_v33, 4 }
 0x47d   :  { %v1715_v48 = vsel %vm983_vm8, 0.0, %v1714_v3  ;;  %v1752_v3 = vrot.slane %v1745_v6, 4  ;;  %v1519_v8 = vsel %vm1515_vm6, %v1514_v2, %v4319_v39 }
 0x47e   :  { %v1748_v46 = vrot.slane %v1735_v27, 4  ;;  %v1751_v39 = vsel %vm983_vm8, 0.0, %v1750_v31 }
 0x47f   :  { %v1426_v32 = vpop.permute.xlu0 %1425  ;;  %v4337_v26 = vpop.permute.xlu1 %1361 }
 0x480   :  { %v1749_v7 = vsel %vm983_vm8, 0.0, %v1748_v46 }
 0x481   :  { %1762 = vrot.lane.b32.xlu1 %v1709_v36, %s3121_s1  ;;  %1794 = vrot.lane.b32.xlu2 %v1711_v51, %s3126_s13  ;;  %v1746_v36 = vrot.slane %v4369_v53, 4  ;;  %v2419_v63 = vpop.permute.xlu2 %2418 }
 0x484   :  { %1778 = vrot.lane.b32.xlu0 %v1697_v35, %s3122_s25  ;;  %v1713_v35 = vsel %vm983_vm8, 0.0, %v1712_v41  ;;  %v1747_v41 = vsel %vm983_vm8, 0.0, %v1746_v36 }
 0x487   :  { %v1474_v34 = vpop.permute.xlu0 %1473  ;;  %v2449_v55 = vpop.permute.xlu1 %2448 }
 0x488   :  { %v2483_v29 = vsel %vm1540_vm13, %v2479_v18, %v2449_v55  ;;  %v1524_v55 = vsel %vm1520_vm9, %v1519_v8, %v4296_v37  ;;  %v2602_v37 = vrot.slane %v3376_v23, 4 }
 0x489   :  { %1810 = vrot.lane.b32.xlu1 %v1713_v35, %s3121_s1  ;;  %1842 = vrot.lane.b32.xlu2 %v1715_v48, %s3126_s13  ;;  %2487 = vst [vmem:[%s4568_s12 + $0x5] sm:$0x1] %v2483_v29  ;;  %v2357_v58 = vpop.permute.xlu2 %2356  ;;  %v2640_v48 = vrot.slane %v3441_v30, 4  ;;  %v2564_v29 = vrot.slane %v3317_v16, 4 }
 0x48a   :  { %v2603_v43 = vsel %vm983_vm8, 0.0, %v2602_v37 }
 0x48b   :  { %v2641_v23 = vsel %vm983_vm8, 0.0, %v2640_v48 }
 0x48c   :  { %1826 = vrot.lane.b32.xlu0 %v1707_v52, %s3122_s25 }
 0x48f   :  { %v2355_v51 = vpop.permute.xlu0 %2354  ;;  %v1410_v5 = vpop.permute.xlu1 %1409 }
 0x490   :  { %v1548_v52 = vsel %vm412_vm7, %v4108_v11, %v1410_v5  ;;  %v1753_v11 = vsel %vm983_vm8, 0.0, %v1752_v3 }
 0x491   :  { %1796 = vrot.lane.b32.xlu1 %v1749_v7, %s3126_s13  ;;  %1780 = vrot.lane.b32.xlu2 %v1735_v27, %s3122_s25  ;;  %v1552_v27 = vsel %vm1515_vm6, %v1548_v52, %v1426_v32  ;;  %v1529_v32 = vsel %vm1525_vm10, %v1524_v55, %v4240_v14  ;;  %v2405_v5 = vpop.permute.xlu2 %2404  ;;  %v2460_v7 = vsel %vm412_vm7, %v4115_v49, %v2355_v51 }
 0x492   :  { %v1556_v35 = vsel %vm1520_vm9, %v1552_v27, %v4305_v56  ;;  %v1534_v56 = vsel %vm1530_vm11, %v1529_v32, %v4337_v26 }
 0x493   :  { %v1539_v14 = vsel %vm1535_vm12, %v1534_v56, %v4317_v21 }
 0x494   :  { %1764 = vrot.lane.b32.xlu0 %v1747_v41, %s3121_s1  ;;  %v1544_v21 = vsel %vm1540_vm13, %v1539_v14, %v4281_v62 }
 0x497   :  { %v2403_v24 = vpop.permute.xlu0 %2402  ;;  %v1458_v18 = vpop.permute.xlu1 %1457 }
 0x498   :  { %v1560_v1 = vsel %vm1525_vm10, %v1556_v35, %v1458_v18 }
 0x499   :  { %1844 = vrot.lane.b32.xlu1 %v1753_v11, %s3126_s13  ;;  %1828 = vrot.lane.b32.xlu2 %v1745_v6, %s3122_s25  ;;  %v1564_v38 = vsel %vm1530_vm11, %v1560_v1, %v1474_v34  ;;  %v2464_v6 = vsel %vm1515_vm6, %v2460_v7, %v4355_v4  ;;  %v2453_v2 = vpop.permute.xlu2 %2452  ;;  %v2461_v4 = vsel %vm412_vm7, %v4152_v47, %v2357_v58  ;;  %s2803_s13 = sshll.u32 %s3129_s28, 4  ;;  %s2804_s13 = int_to_ptr.vmem [resolvable:$true] %s2803_s13 }
 0x49a   :  { %v1568_v46 = vsel %vm1535_vm12, %v1564_v38, %v4331_v45  ;;  %v2565_v45 = vsel %vm983_vm8, 0.0, %v2564_v29 }
 0x49c   :  { %1812 = vrot.lane.b32.xlu0 %v1751_v39, %s3121_s1 }
 0x49f   :  { %v1506_v30 = vpop.permute.xlu1 %1505  ;;  %v2451_v16 = vpop.permute.xlu0 %2450 }
 0x4a0   :  { %v1572_v26 = vsel %vm1540_vm13, %v1568_v46, %v1506_v30 }
 0x4a1   :  { %2748 = vrot.lane.b32.xlu1 %v2641_v23, %s3124_s27  ;;  %2746 = vrot.lane.b32.xlu2 %v2603_v43, %s3124_s27  ;;  %v1584_v34 = vrot.slane %v1572_v26, 7  ;;  %v1775_v11 = vpop.permute.xlu2 %1774 }
 0x4a3   :  { %v1589_v36 = vsel %vm1585_vm1, %v1544_v21, %v1584_v34 }
 0x4a4   :  { %2744 = vrot.lane.b32.xlu0 %v2565_v45, %s3124_s27  ;;  %1601 = vst.msk [vmem:[#allocation13 + $0x6] sm:$0x3] %vm4068_vm4, %v1589_v36 }
 0x4a5   :  { %2798 = dma.vmem_to_hbm [thread:$0]  %s2791_s23, 128, %s2793_s22, [#allocation4], %s3121_s1, %s3121_s1, %s3128_s10  }
 0x4a7   :  { %v2387_v62 = vpop.permute.xlu1 %2386  ;;  %v2389_v41 = vpop.permute.xlu0 %2388 }
 0x4a8   :  { %v2468_v52 = vsel %vm1520_vm9, %v2464_v6, %v2387_v62 }
 0x4a9   :  { %v2472_v3 = vsel %vm1525_vm10, %v2468_v52, %v2403_v24  ;;  %v1823_v48 = vpop.permute.xlu2 %1822 }
 0x4aa   :  { %v2476_v8 = vsel %vm1530_vm11, %v2472_v3, %v2419_v63  ;;  %v2756_v3 = vsel %vm412_vm7, %v3332_v28, %v3530_v10 }
 0x4af   :  { %v2435_v27 = vpop.permute.xlu1 %2434  ;;  %v2437_v31 = vpop.permute.xlu0 %2436 }
 0x4b0   :  { %v2480_v49 = vsel %vm1535_vm12, %v2476_v8, %v2435_v27  ;;  %v2760_v27 = vsel %vm1515_vm6, %v2756_v3, %v3569_v61 }
 0x4b1   :  { %v2484_v51 = vsel %vm1540_vm13, %v2480_v49, %v2451_v16 }
 0x4b2   :  { %2488 = vst [vmem:[%s4568_s12 + $0x9] sm:$0x1] %v2484_v51 }
 0x4b7   :  { %v2373_v18 = vpop.permute.xlu1 %2372  ;;  %v1759_v63 = vpop.permute.xlu0 %1758 }
 0x4b8   :  { %v2465_v24 = vsel %vm1515_vm6, %v2461_v4, %v2373_v18  ;;  %v1850_v29 = vsel %vm1515_vm6, %v4216_v54, %v1759_v63 }
 0x4b9   :  { %v2469_v55 = vsel %vm1520_vm9, %v2465_v24, %v2389_v41  ;;  %v1854_v23 = vsel %vm1525_vm10, %v1850_v29, %v1775_v11 }
 0x4ba   :  { %v2473_v35 = vsel %vm1525_vm10, %v2469_v55, %v2405_v5 }
 0x4bf   :  { %v2421_v1 = vpop.permute.xlu1 %2420  ;;  %v1807_v58 = vpop.permute.xlu0 %1806 }
 0x4c0   :  { %v2477_v39 = vsel %vm1530_vm11, %v2473_v35, %v2421_v1  ;;  %v1862_v38 = vsel %vm1515_vm6, %v4232_v20, %v1807_v58 }
 0x4c1   :  { %v2481_v32 = vsel %vm1535_vm12, %v2477_v39, %v2437_v31  ;;  %v1866_v14 = vsel %vm1525_vm10, %v1862_v38, %v1823_v48  ;;  %v2764_v31 = vsel %vm1520_vm9, %v2760_v27, %v3534_v13  ;;  %v2755_v48 = vsel %vm412_vm7, %v3352_v50, %v3512_v25 }
 0x4c2   :  { %v2485_v37 = vsel %vm1540_vm13, %v2481_v32, %v2453_v2  ;;  %v2768_v28 = vsel %vm1525_vm10, %v2764_v31, %v3541_v59  ;;  %v2759_v58 = vsel %vm1515_vm6, %v2755_v48, %v3510_v60  ;;  %v4583_v60 = vld [vmem:[#allocation28_spill] sm:$0xff] }
 0x4c3   :  { %2489 = vst [vmem:[%s4568_s12 + $0xd] sm:$0x1] %v2485_v37  ;;  %v2772_v10 = vsel %vm1530_vm11, %v2768_v28, %v3582_v17 }
 0x4c4   :  { %v2776_v61 = vsel %vm1535_vm12, %v2772_v10, %v3545_v22 }
 0x4c7   :  { %v1791_v47 = vpop.permute.xlu1 %1790 }
 0x4c8   :  { %v1858_v26 = vsel %vm1535_vm12, %v1854_v23, %v1791_v47 }
 0x4cb   :  { %v1761_v56 = vpop.permute.xlu2 %1760 }
 0x4cc   :  { %v1851_v52 = vsel %vm1515_vm6, %v4286_v15, %v1761_v56 }
 0x4cf   :  { %v1839_v46 = vpop.permute.xlu1 %1838 }
 0x4d0   :  { %v1870_v30 = vsel %vm1535_vm12, %v1866_v14, %v1839_v46  ;;  %v4580_v14 = vld [vmem:[#allocation24_spill] sm:$0xff] }
 0x4d1   :  { %v1882_v43 = vrot.slane %v1870_v30, 7 }
 0x4d3   :  { %v1809_v16 = vpop.permute.xlu2 %1808  ;;  %v1886_v34 = vsel %vm1585_vm1, %v1858_v26, %v1882_v43 }
 0x4d4   :  { %1894 = vst.msk [vmem:[#allocation14] sm:$0x3] %vm4068_vm4, %v1886_v34  ;;  %v1863_v7 = vsel %vm1515_vm6, %v4294_v12, %v1809_v16  ;;  %v4585_v34 = vld [vmem:[#allocation26_spill] sm:$0xff] }
 0x4db   :  { %v1795_v20 = vpop.permute.xlu2 %1794 }
 0x4e3   :  { %v1843_v21 = vpop.permute.xlu2 %1842  ;;  %v1777_v45 = vpop.permute.xlu1 %1776 }
 0x4e4   :  { %v1855_v2 = vsel %vm1525_vm10, %v1851_v52, %v1777_v45 }
 0x4e6   :  { %v1793_v54 = vpop.permute.xlu0 %1792 }
 0x4e7   :  { %v1859_v12 = vsel %vm1535_vm12, %v1855_v2, %v1793_v54 }
 0x4eb   :  { %v1781_v36 = vpop.permute.xlu2 %1780  ;;  %v1825_v5 = vpop.permute.xlu1 %1824 }
 0x4ec   :  { %v1867_v62 = vsel %vm1525_vm10, %v1863_v7, %v1825_v5 }
 0x4ee   :  { %v1841_v6 = vpop.permute.xlu0 %1840 }
 0x4ef   :  { %v1871_v41 = vsel %vm1535_vm12, %v1867_v62, %v1841_v6 }
 0x4f0   :  { %v1883_v8 = vrot.slane %v1871_v41, 7 }
 0x4f2   :  { %v1887_v49 = vsel %vm1585_vm1, %v1859_v12, %v1883_v8 }
 0x4f3   :  { %1895 = vst.msk [vmem:[#allocation14 + $0x2] sm:$0x3] %vm4068_vm4, %v1887_v49  ;;  %v1829_v15 = vpop.permute.xlu2 %1828  ;;  %v1763_v51 = vpop.permute.xlu1 %1762 }
 0x4f4   :  { %v1852_v13 = vsel %vm1515_vm6, %v4314_v19, %v1763_v51 }
 0x4f6   :  { %v1779_v18 = vpop.permute.xlu0 %1778 }
 0x4f7   :  { %v1856_v17 = vsel %vm1525_vm10, %v1852_v13, %v1779_v18 }
 0x4f8   :  { %v1860_v1 = vsel %vm1535_vm12, %v1856_v17, %v1795_v20 }
 0x4fb   :  { %v2747_v4 = vpop.permute.xlu2 %2746  ;;  %v1811_v11 = vpop.permute.xlu1 %1810 }
 0x4fc   :  { %v2780_v24 = vsel %vm1540_vm13, %v2776_v61, %v2747_v4  ;;  %v1864_v59 = vsel %vm1515_vm6, %v4335_v57, %v1811_v11  ;;  %v2757_v57 = vsel %vm412_vm7, %v3394_v42, %v3596_v44  ;;  %v2763_v42 = vsel %vm1520_vm9, %v2759_v58, %v4580_v14  ;;  %v4581_v44 = vld [vmem:[#allocation27_spill] sm:$0xff] }
 0x4fd   :  { %2784 = vst [vmem:[%s4568_s12 + $0xa] sm:$0x1] %v2780_v24  ;;  %v2761_v37 = vsel %vm1515_vm6, %v2757_v57, %v3557_v40  ;;  %v4582_v40 = vld [vmem:[#allocation23_spill] sm:$0xff] }
 0x4fe   :  { %v1827_v55 = vpop.permute.xlu0 %1826  ;;  %v2765_v38 = vsel %vm1520_vm9, %v2761_v37, %v3572_v9  ;;  %v2767_v46 = vsel %vm1525_vm10, %v2763_v42, %v4582_v40 }
 0x4ff   :  { %v1868_v63 = vsel %vm1525_vm10, %v1864_v59, %v1827_v55  ;;  %v2769_v50 = vsel %vm1525_vm10, %v2765_v38, %v4581_v44 }
 0x500   :  { %v1872_v22 = vsel %vm1535_vm12, %v1868_v63, %v1843_v21  ;;  %v2773_v30 = vsel %vm1530_vm11, %v2769_v50, %v4583_v60 }
 0x501   :  { %v1884_v35 = vrot.slane %v1872_v22, 7  ;;  %v2777_v20 = vsel %vm1535_vm12, %v2773_v30, %v4585_v34 }
 0x503   :  { %v1888_v39 = vsel %vm1585_vm1, %v1860_v1, %v1884_v35  ;;  %v1797_v32 = vpop.permute.xlu1 %1796 }
 0x504   :  { %1896 = vst.msk [vmem:[#allocation14 + $0x4] sm:$0x3] %vm4068_vm4, %v1888_v39 }
 0x506   :  { %v1765_v19 = vpop.permute.xlu0 %1764 }
 0x507   :  { %v1853_v56 = vsel %vm1515_vm6, %v4369_v53, %v1765_v19 }
 0x508   :  { %v1857_v53 = vsel %vm1525_vm10, %v1853_v56, %v1781_v36  ;;  %v4586_v36 = vld [vmem:[#allocation25_spill] sm:$0xff] }
 0x509   :  { %v1861_v16 = vsel %vm1535_vm12, %v1857_v53, %v1797_v32 }
 0x50b   :  { %v1845_v47 = vpop.permute.xlu1 %1844 }
 0x50e   :  { %v1813_v29 = vpop.permute.xlu0 %1812 }
 0x50f   :  { %v1865_v25 = vsel %vm1515_vm6, %v4379_v33, %v1813_v29  ;;  %v4584_v33 = vld [vmem:[#allocation22_spill] sm:$0xff] }
 0x510   :  { %v1869_v9 = vsel %vm1525_vm10, %v1865_v25, %v1829_v15  ;;  %v2771_v26 = vsel %vm1530_vm11, %v2767_v46, %v4584_v33 }
 0x511   :  { %v1873_v23 = vsel %vm1535_vm12, %v1869_v9, %v1845_v47  ;;  %v2775_v5 = vsel %vm1535_vm12, %v2771_v26, %v4586_v36 }
 0x512   :  { %v1885_v43 = vrot.slane %v1873_v23, 7 }
 0x513   :  { %v2749_v21 = vpop.permute.xlu1 %2748 }
 0x514   :  { %v1889_v45 = vsel %vm1585_vm1, %v1861_v16, %v1885_v43  ;;  %v2781_v54 = vsel %vm1540_vm13, %v2777_v20, %v2749_v21 }
 0x515   :  { %1897 = vst.msk [vmem:[#allocation14 + $0x6] sm:$0x3] %vm4068_vm4, %v1889_v45 }
 0x516   :  { %2785 = vst [vmem:[%s4568_s12 + $0xe] sm:$0x1] %v2781_v54  ;;  %v2745_v7 = vpop.permute.xlu0 %2744 }
 0x517   :  { %v2779_v62 = vsel %vm1540_vm13, %v2775_v5, %v2745_v7  ;;  %2811 = dma.vmem_to_hbm [thread:$0]  %s2804_s13, 128, %s2806_s29, [#allocation15], %s3121_s1, %s3121_s1, %s3128_s10  }
 0x518   :  { %2783 = vst [vmem:[%s4568_s12 + $0x6] sm:$0x1] %v2779_v62 }
 0x519   :  { %3105 = dma.done.wait [#allocation4], 128  }
 0x51a   :  { %3106 = vsyncadd [#allocation4], 4294967168 }
 0x51b   :  { %3107 = dma.done.wait [#allocation15], 128  }
 0x51c   :  { %3108 = vsyncadd [#allocation15], 4294967168 }
 0x51d   :  { %2824 = vsyncpa [#allocation3], 1 }
 0x51e   :  { %2825 = vsyncpa [#allocation6], 1 }
 0x51f   :  { %2826 = vsyncpa [#allocation9], 1 }
 0x520   :  { %2827 = vsyncpa [#allocation12], 1 }
 0x521   :  { %2828 = vsyncpa [#allocation4], 1 }
 0x522   :  { %2829 = vsyncpa [#allocation15], 1 }

</bundles_post_ra>
